<compile_context>
chip_gen: v7x
topology: tpu7x:2x2x1
jax: 0.10.0
libtpu: 0.0.40
codegen_flags: <defaults>
</compile_context>

<pallas_src>
import functools

import numpy as np
import jax
import jax.numpy as jnp
from jax import lax
from jax.experimental import pallas as pl
from jax.experimental.pallas import tpu as pltpu

G_PAD = 128      # lane-padded graph_state_dim (node_feature_processor output)
NSD_PAD = 128    # lane-padded node_state_dim (keeps h / update-MLP lane-dense)

# dot_general dimension numbers contracting dim 0 of both operands ("T-N"):
# used for the segment-sum scatter so transposed one-hots are never shipped.
_TN = (((0,), (0,)), ((), ()))


def _round_up(x, m):
    return ((x + m - 1) // m) * m


def _full_spec(shape):
    """Whole-array block, revisited (not re-DMA'd) on every grid step."""
    rank = len(shape)
    return pl.BlockSpec(tuple(int(d) for d in shape), lambda i, _r=rank: (0,) * _r)


def _pick_group(n_items, rows_per_item, row_target):
    """Largest divisor of n_items whose block stays within row_target rows while
    keeping >= 2 grid steps (so the v7x megacore has independent steps)."""
    best = 1
    for cand in range(1, n_items + 1):
        if n_items % cand:
            continue
        if cand * rows_per_item > row_target:
            continue
        if n_items // cand >= 2 or n_items == 1:
            best = cand
    return best


# ----------------------------------------------------------------------------
# Fused GNN kernel: encoder + n_prop_layers + gated node-feature processor
# ----------------------------------------------------------------------------
def _gnn_kernel(nf_ref, ef_ref, gfrom_ref, gto_ref,
                wen_ref, ben_ref, wee_ref, bee_ref,
                wmf_ref, wmt_ref, wme_ref, bm1_ref, wm2_ref, bm2_ref,
                wua_ref, wuh_ref, bu1_ref, wu2_ref, bu2_ref,
                wag_ref, bag_ref,
                o_ref, *, n_prop_layers, msg_dim):
    f32 = jnp.float32

    # --- GraphEncoder: one Linear each for node / edge features ---
    h = jnp.dot(nf_ref[...], wen_ref[...], preferred_element_type=f32) + ben_ref[...]
    e = jnp.dot(ef_ref[...], wee_ref[...], preferred_element_type=f32) + bee_ref[...]

    # Edge-feature term of message layer 1 is constant across prop layers.
    e_msg = jnp.dot(e, wme_ref[...], preferred_element_type=f32) + bm1_ref[...]

    # Shared GraphPropLayer, statically unrolled.  Weight refs are re-read each
    # iteration (cheap VMEM loads) instead of being pinned in vregs.
    for _ in range(n_prop_layers):
        g_from = gfrom_ref[...]          # (GBE, GBS) f32 one-hot — exact gathers
        g_to = gto_ref[...]

        from_states = jnp.dot(g_from, h, preferred_element_type=f32)    # h[from_idx]
        to_states = jnp.dot(g_to, h, preferred_element_type=f32)        # h[to_idx]

        # fused forward+reverse message net, layer 1 (2*msg_dim output lanes)
        m1 = jnp.dot(from_states, wmf_ref[...], preferred_element_type=f32)
        m1 = m1 + jnp.dot(to_states, wmt_ref[...], preferred_element_type=f32)
        m1 = jnp.maximum(m1 + e_msg, 0.0)
        # layer 2: block-diagonal weight keeps fwd/rev halves independent
        m2 = jnp.dot(m1, wm2_ref[...], preferred_element_type=f32) + bm2_ref[...]

        # segment sums: fwd half scattered by to_idx, reverse half by from_idx.
        # lax.dot_general contracts the edge axis (no transposed one-hot copies).
        agg = lax.dot_general(g_to, m2[:, :msg_dim], _TN, preferred_element_type=f32)
        agg = agg + lax.dot_general(g_from, m2[:, msg_dim:], _TN,
                                    preferred_element_type=f32)          # (GBS, msg)

        # residual node-update MLP (split weights instead of concat([agg, h]))
        u = jnp.dot(agg, wua_ref[...], preferred_element_type=f32)
        u = u + jnp.dot(h, wuh_ref[...], preferred_element_type=f32) + bu1_ref[...]
        u = jnp.maximum(u, 0.0)
        u = jnp.dot(u, wu2_ref[...], preferred_element_type=f32) + bu2_ref[...]
        h = h + u

    # gated node_feature_processor: [gate | value] in one lane-padded matmul.
    # Padded lanes of the value half are exactly 0, so they add 0 to the scores.
    gv = jnp.dot(h, wag_ref[...], preferred_element_type=f32) + bag_ref[...]
    gp = gv.shape[1] // 2
    o_ref[...] = (jax.nn.sigmoid(gv[:, :gp]) * gv[:, gp:]).astype(o_ref.dtype)


# ----------------------------------------------------------------------------
# ColBERT MaxSim kernel, blocked over groups of pairs
# ----------------------------------------------------------------------------
def _maxsim_kernel(h_ref, qmask_ref, cbias_ref, o_ref, *, s_pad):
    hv = h_ref[...]                                    # (TB, 2*S, G) bf16
    q = hv[:, :s_pad, :]                               # query node features
    c = hv[:, s_pad:, :]                               # corpus node features
    sim = jnp.einsum("bqd,bkd->bqk", q, c, preferred_element_type=jnp.float32)
    sim = sim + cbias_ref[...]                         # -1e30 on padded corpus cols
    best = jnp.max(sim, axis=-1, keepdims=True)        # (TB, S, 1)
    best = best * qmask_ref[...]                       # zero padded query rows
    o_ref[...] = jnp.sum(best, axis=1, keepdims=True)  # (TB, 1, 1)


def pallas_colbert_maxsim(h_pairs, q_mask, c_bias):
    bsz, two_s, d = h_pairs.shape
    s_pad = two_s // 2
    tb = _pick_group(bsz, 1, row_target=16)     # up to 16 pairs per step, grid >= 2
    out = pl.pallas_call(
        functools.partial(_maxsim_kernel, s_pad=s_pad),
        out_shape=jax.ShapeDtypeStruct((bsz, 1, 1), jnp.float32),
        grid=(bsz // tb,),
        in_specs=[
            pl.BlockSpec((tb, two_s, d), lambda b: (b, 0, 0)),
            pl.BlockSpec((tb, s_pad, 1), lambda b: (b, 0, 0)),
            pl.BlockSpec((tb, 1, s_pad), lambda b: (b, 0, 0)),
        ],
        out_specs=pl.BlockSpec((tb, 1, 1), lambda b: (b, 0, 0)),
        compiler_params=pltpu.CompilerParams(dimension_semantics=("parallel",)),
    )(h_pairs, q_mask, c_bias)
    return out[:, 0, 0]


# ----------------------------------------------------------------------------
# Parameter packing (module-style params -> kernel-ready fused/split weights)
# ----------------------------------------------------------------------------
def pack_params(params, node_state_dim, msg_dim, nsd_pad=NSD_PAD, g_pad=G_PAD):
    nsd = node_state_dim

    def pad_cols(w, n):
        return jnp.pad(w, ((0, 0), (0, n - w.shape[1])))

    def pad_rows(w, n):
        return jnp.pad(w, ((0, n - w.shape[0]), (0, 0)))

    def pad_vec(b, n):
        return jnp.pad(b, (0, n - b.shape[0]))

    w_en, b_en = params["enc_node"]
    w_ee, b_ee = params["enc_edge"]
    w_m1, b_m1 = params["msg1"]
    w_r1, b_r1 = params["rmsg1"]
    w_m2, b_m2 = params["msg2"]
    w_r2, b_r2 = params["rmsg2"]
    w_u1, b_u1 = params["upd1"]
    w_u2, b_u2 = params["upd2"]

    # Encoder: pad node-state columns to nsd_pad (extra columns stay exactly 0).
    w_en_p = pad_cols(w_en, nsd_pad)
    b_en_p = pad_vec(b_en, nsd_pad).reshape(1, -1)

    # fwd net input order [from, to, e]; reverse net input order [to, from, e].
    w_from = pad_rows(jnp.concatenate([w_m1[:nsd], w_r1[nsd:2 * nsd]], axis=1), nsd_pad)
    w_to = pad_rows(jnp.concatenate([w_m1[nsd:2 * nsd], w_r1[:nsd]], axis=1), nsd_pad)
    w_edge = jnp.concatenate([w_m1[2 * nsd:], w_r1[2 * nsd:]], axis=1)
    b_msg1 = jnp.concatenate([b_m1, b_r1]).reshape(1, -1)

    z = jnp.zeros((msg_dim, msg_dim), jnp.float32)
    w_msg2 = jnp.concatenate([jnp.concatenate([w_m2, z], axis=1),
                              jnp.concatenate([z, w_r2], axis=1)], axis=0)
    b_msg2 = jnp.concatenate([b_m2, b_r2]).reshape(1, -1)

    # update MLP: split [agg | h] weights; pad node-state dims to nsd_pad.
    w_u_agg = pad_cols(w_u1[:msg_dim], nsd_pad)
    w_u_h = pad_rows(pad_cols(w_u1[msg_dim:], nsd_pad), nsd_pad)
    b_u1_p = pad_vec(b_u1, nsd_pad).reshape(1, -1)
    w_u2_p = pad_rows(pad_cols(w_u2, nsd_pad), nsd_pad)
    b_u2_p = pad_vec(b_u2, nsd_pad).reshape(1, -1)

    # gated processor: [gate | value], each lane-padded to g_pad, rows to nsd_pad.
    w_aggr = pad_rows(jnp.concatenate([pad_cols(params["agg_wg"], g_pad),
                                       pad_cols(params["agg_wv"], g_pad)], axis=1),
                      nsd_pad)
    b_aggr = jnp.concatenate([pad_vec(params["agg_bg"], g_pad),
                              pad_vec(params["agg_bv"], g_pad)]).reshape(1, -1)

    return (w_en_p, b_en_p, w_ee, b_ee.reshape(1, -1),
            w_from, w_to, w_edge, b_msg1, w_msg2, b_msg2,
            w_u_agg, w_u_h, b_u1_p, w_u2_p, b_u2_p,
            w_aggr, b_aggr)


# ----------------------------------------------------------------------------
# Forward pass (GMN_embed_with_MLP_and_ColBERT_scores.forward semantics)
# ----------------------------------------------------------------------------
def gmn_embed_colbert_forward(packed_weights, node_features, edge_features,
                              from_idx, to_idx, batch_data_sizes,
                              max_set_size, n_prop_layers, msg_dim):
    # TODO(synk): batch_data_sizes and the edge structure are consumed as static
    # Python/NumPy values (slot maps, group-local one-hots, masks), so a new
    # batch composition triggers a retrace — same deployment caveat as before.
    counts = [int(c) for pair in batch_data_sizes for c in pair]
    num_graphs = len(counts)
    assert num_graphs % 2 == 0
    bsz = num_graphs // 2
    assert all(c <= max_set_size for c in counts)
    n_nodes = int(sum(counts))
    din = int(node_features.shape[1])
    ded = int(edge_features.shape[1])

    S_pad = _round_up(max(int(max_set_size), 8), 8)

    # ---- host-side (static) slot maps: per-graph node slots & edge slots ----
    from_np = np.asarray(from_idx, dtype=np.int64)
    to_np = np.asarray(to_idx, dtype=np.int64)
    n_edges = int(from_np.shape[0])
    offs = np.concatenate([[0], np.cumsum(counts)]).astype(np.int64)
    edge_graph = np.searchsorted(offs, from_np, side="right") - 1
    from_local = from_np - offs[edge_graph]
    to_local = to_np - offs[edge_graph]
    edges_per_graph = np.bincount(edge_graph, minlength=num_graphs)
    E_max = int(_round_up(max(int(edges_per_graph.max()), 8), 8))
    edge_slot = np.zeros(n_edges, np.int64)
    ctr = np.zeros(num_graphs, np.int64)
    for k in range(n_edges):
        g = int(edge_graph[k])
        edge_slot[k] = ctr[g]
        ctr[g] += 1
    edge_row = edge_graph * E_max + edge_slot

    # ---- grouping: TP graph pairs (= 2*TP graphs) per fused-GNN grid step ----
    TP = _pick_group(bsz, 2 * S_pad, row_target=256)
    GB = 2 * TP
    GBS = GB * S_pad
    GBE = GB * E_max
    num_groups = bsz // TP

    # per-slot node features: one gather (padded slots -> appended zero row)
    slot_idx = np.full((num_graphs, S_pad), n_nodes, np.int64)
    for g, cnt in enumerate(counts):
        slot_idx[g, :cnt] = offs[g] + np.arange(cnt)
    nf_flat = jnp.concatenate(
        [node_features.astype(jnp.float32), jnp.zeros((1, din), jnp.float32)], axis=0
    )[jnp.asarray(slot_idx.reshape(-1))]                               # (2B*S_pad, din)

    # per-slot edge features: one scatter (padded slots stay zero)
    ef_flat = jnp.zeros((num_graphs * E_max, ded), jnp.float32).at[
        jnp.asarray(edge_row)].set(edge_features.astype(jnp.float32))

    # group-local one-hot gather matrices (f32 -> exact gathers / segment sums)
    col_from = (edge_graph % GB) * S_pad + from_local
    col_to = (edge_graph % GB) * S_pad + to_local
    g_from_oh = np.zeros((num_graphs * E_max, GBS), np.float32)
    g_to_oh = np.zeros((num_graphs * E_max, GBS), np.float32)
    g_from_oh[edge_row, col_from] = 1.0
    g_to_oh[edge_row, col_to] = 1.0

    args = (nf_flat, ef_flat, jnp.asarray(g_from_oh), jnp.asarray(g_to_oh)) \
        + tuple(packed_weights)
    in_specs = [
        pl.BlockSpec((GBS, din), lambda i: (i, 0)),
        pl.BlockSpec((GBE, ded), lambda i: (i, 0)),
        pl.BlockSpec((GBE, GBS), lambda i: (i, 0)),
        pl.BlockSpec((GBE, GBS), lambda i: (i, 0)),
    ] + [_full_spec(w.shape) for w in packed_weights]

    h_flat = pl.pallas_call(
        functools.partial(_gnn_kernel, n_prop_layers=n_prop_layers, msg_dim=msg_dim),
        out_shape=jax.ShapeDtypeStruct((num_graphs * S_pad, G_PAD), jnp.bfloat16),
        grid=(num_groups,),
        in_specs=in_specs,
        out_specs=pl.BlockSpec((GBS, G_PAD), lambda i: (i, 0)),
        compiler_params=pltpu.CompilerParams(
            dimension_semantics=("parallel",),
            # 48 MiB fits every generation (v7x physical VMEM is 64 MiB).
            vmem_limit_bytes=48 * 1024 * 1024),
    )(*args)

    # (2B*S_pad, G) -> (B, 2*S_pad, G): free row-major reshape — the only op
    # between the two kernels (no per-pair dynamic slicing / padding / stacking).
    h_pairs = h_flat.reshape(bsz, 2 * S_pad, G_PAD)

    # MaxSim masks: padded corpus columns excluded from the max, padded query
    # rows excluded from the sum.
    q_mask = np.zeros((bsz, S_pad, 1), np.float32)
    c_bias = np.zeros((bsz, 1, S_pad), np.float32)
    for b, (qs, cs) in enumerate(batch_data_sizes):
        q_mask[b, :int(qs), 0] = 1.0
        c_bias[b, 0, int(cs):] = -1e30
    # TODO(synk): an empty corpus graph (cs == 0) would yield a huge negative
    # score rather than the reference's undefined max-over-empty set.

    return pallas_colbert_maxsim(h_pairs, jnp.asarray(q_mask), jnp.asarray(c_bias))


# ----------------------------------------------------------------------------
# Deterministic parameter init (shapes follow the module's build_layers)
# ----------------------------------------------------------------------------
def init_linear(key, din, dout, scale=0.1):
    kw, kb = jax.random.split(key)
    w = scale * jax.random.normal(kw, (din, dout), jnp.float32)
    b = scale * jax.random.normal(kb, (dout,), jnp.float32)
    return w, b


if __name__ == "__main__":
    key = jax.random.PRNGKey(0)

    # ----- config (synthetic, small) -----
    input_dim = 8              # raw node feature dim
    edge_feat_dim = 4          # raw edge feature dim
    node_state_dim = 32        # encoder / prop-layer node state dim (padded to 128)
    edge_enc_dim = 16          # encoded edge feature dim
    msg_dim = 2 * node_state_dim   # 64 -> fused fwd+rev message width = 128 lanes
    graph_state_dim = 48       # node_feature_processor output dim (padded to 128)
    n_prop_layers = 3
    MAX_QUERY_SUBGRAPH_SIZE = 8
    MAX_CORPUS_SUBGRAPH_SIZE = 8
    max_set_size = max(MAX_QUERY_SUBGRAPH_SIZE, MAX_CORPUS_SUBGRAPH_SIZE)

    # (query_size, corpus_size) per pair; graphs concatenated as q0,c0,q1,c1
    batch_data_sizes = [(5, 7), (4, 6)]
    counts = [c for p in batch_data_sizes for c in p]
    n_nodes = sum(counts)      # 22

    keys = jax.random.split(key, 12)
    params = {
        "enc_node": init_linear(keys[0], input_dim, node_state_dim),
        "enc_edge": init_linear(keys[1], edge_feat_dim, edge_enc_dim),
        "msg1":  init_linear(keys[2], 2 * node_state_dim + edge_enc_dim, msg_dim),
        "msg2":  init_linear(keys[3], msg_dim, msg_dim),
        "rmsg1": init_linear(keys[4], 2 * node_state_dim + edge_enc_dim, msg_dim),
        "rmsg2": init_linear(keys[5], msg_dim, msg_dim),
        "upd1":  init_linear(keys[6], msg_dim + node_state_dim, node_state_dim),
        "upd2":  init_linear(keys[7], node_state_dim, node_state_dim),
    }
    agg_w, agg_b = init_linear(keys[8], node_state_dim, 2 * graph_state_dim)
    params["agg_wg"], params["agg_bg"] = agg_w[:, :graph_state_dim], agg_b[:graph_state_dim]
    params["agg_wv"], params["agg_bv"] = agg_w[:, graph_state_dim:], agg_b[graph_state_dim:]

    packed_weights = pack_params(params, node_state_dim, msg_dim)

    # ----- synthetic batch (get_graph equivalent) -----
    node_features = jax.random.normal(keys[9], (n_nodes, input_dim), jnp.float32)

    # edges: a directed cycle inside each graph
    edges, off = [], 0
    for c in counts:
        for j in range(c):
            edges.append((off + j, off + (j + 1) % c))
        off += c
    from_idx = jnp.array([a for a, _ in edges], dtype=jnp.int32)
    to_idx = jnp.array([b for _, b in edges], dtype=jnp.int32)
    n_edges = len(edges)
    edge_features = jax.random.normal(keys[10], (n_edges, edge_feat_dim), jnp.float32)

    scores = gmn_embed_colbert_forward(
        packed_weights, node_features, edge_features, from_idx, to_idx,
        batch_data_sizes, max_set_size, n_prop_layers, msg_dim)
    jax.block_until_ready(scores)
    assert scores.shape == (len(batch_data_sizes),)
    assert bool(jnp.all(jnp.isfinite(scores)))
    print("KERNEL_OK")
</pallas_src>

<mosaic_0001>
module attributes {stable_mosaic.version = 11 : i64} {
  func.func @_gnn_kernel(%arg0: i32, %arg1: memref<16x8xf32, #tpu.memory_space<vmem>>, %arg2: memref<16x4xf32, #tpu.memory_space<vmem>>, %arg3: memref<16x16xf32, #tpu.memory_space<vmem>>, %arg4: memref<16x16xf32, #tpu.memory_space<vmem>>, %arg5: memref<8x128xf32, #tpu.memory_space<vmem>>, %arg6: memref<1x128xf32, #tpu.memory_space<vmem>>, %arg7: memref<4x16xf32, #tpu.memory_space<vmem>>, %arg8: memref<1x16xf32, #tpu.memory_space<vmem>>, %arg9: memref<128x128xf32, #tpu.memory_space<vmem>>, %arg10: memref<128x128xf32, #tpu.memory_space<vmem>>, %arg11: memref<16x128xf32, #tpu.memory_space<vmem>>, %arg12: memref<1x128xf32, #tpu.memory_space<vmem>>, %arg13: memref<128x128xf32, #tpu.memory_space<vmem>>, %arg14: memref<1x128xf32, #tpu.memory_space<vmem>>, %arg15: memref<64x128xf32, #tpu.memory_space<vmem>>, %arg16: memref<128x128xf32, #tpu.memory_space<vmem>>, %arg17: memref<1x128xf32, #tpu.memory_space<vmem>>, %arg18: memref<128x128xf32, #tpu.memory_space<vmem>>, %arg19: memref<1x128xf32, #tpu.memory_space<vmem>>, %arg20: memref<128x256xf32, #tpu.memory_space<vmem>>, %arg21: memref<1x256xf32, #tpu.memory_space<vmem>>, %arg22: memref<16x128xbf16, #tpu.memory_space<vmem>>) attributes {dimension_semantics = [#tpu.dimension_semantics<parallel>], iteration_bounds = array<i64: 2>, scalar_prefetch = 0 : i64, scratch_operands = 0 : i64, tpu.core_type = #tpu.core_type<tc>, window_params = [{transform_indices = @transform_0, window_bounds = array<i64: 16, 8>}, {transform_indices = @transform_1, window_bounds = array<i64: 16, 4>}, {transform_indices = @transform_2, window_bounds = array<i64: 16, 16>}, {transform_indices = @transform_3, window_bounds = array<i64: 16, 16>}, {pipeline_mode = #tpu.pipeline_mode<synchronous>, transform_indices = @transform_4, window_bounds = array<i64: 8, 128>}, {pipeline_mode = #tpu.pipeline_mode<synchronous>, transform_indices = @transform_5, window_bounds = array<i64: 1, 128>}, {pipeline_mode = #tpu.pipeline_mode<synchronous>, transform_indices = @transform_6, window_bounds = array<i64: 4, 16>}, {pipeline_mode = #tpu.pipeline_mode<synchronous>, transform_indices = @transform_7, window_bounds = array<i64: 1, 16>}, {pipeline_mode = #tpu.pipeline_mode<synchronous>, transform_indices = @transform_8, window_bounds = array<i64: 128, 128>}, {pipeline_mode = #tpu.pipeline_mode<synchronous>, transform_indices = @transform_9, window_bounds = array<i64: 128, 128>}, {pipeline_mode = #tpu.pipeline_mode<synchronous>, transform_indices = @transform_10, window_bounds = array<i64: 16, 128>}, {pipeline_mode = #tpu.pipeline_mode<synchronous>, transform_indices = @transform_11, window_bounds = array<i64: 1, 128>}, {pipeline_mode = #tpu.pipeline_mode<synchronous>, transform_indices = @transform_12, window_bounds = array<i64: 128, 128>}, {pipeline_mode = #tpu.pipeline_mode<synchronous>, transform_indices = @transform_13, window_bounds = array<i64: 1, 128>}, {pipeline_mode = #tpu.pipeline_mode<synchronous>, transform_indices = @transform_14, window_bounds = array<i64: 64, 128>}, {pipeline_mode = #tpu.pipeline_mode<synchronous>, transform_indices = @transform_15, window_bounds = array<i64: 128, 128>}, {pipeline_mode = #tpu.pipeline_mode<synchronous>, transform_indices = @transform_16, window_bounds = array<i64: 1, 128>}, {pipeline_mode = #tpu.pipeline_mode<synchronous>, transform_indices = @transform_17, window_bounds = array<i64: 128, 128>}, {pipeline_mode = #tpu.pipeline_mode<synchronous>, transform_indices = @transform_18, window_bounds = array<i64: 1, 128>}, {pipeline_mode = #tpu.pipeline_mode<synchronous>, transform_indices = @transform_19, window_bounds = array<i64: 128, 256>}, {pipeline_mode = #tpu.pipeline_mode<synchronous>, transform_indices = @transform_20, window_bounds = array<i64: 1, 256>}, {transform_indices = @transform_21, window_bounds = array<i64: 16, 128>}]} {
    %c0 = arith.constant 0 : index
    %c0_0 = arith.constant 0 : index
    %0 = vector.load %arg1[%c0, %c0_0] : memref<16x8xf32, #tpu.memory_space<vmem>>, vector<16x8xf32>
    %c0_1 = arith.constant 0 : index
    %c0_2 = arith.constant 0 : index
    %1 = vector.load %arg5[%c0_1, %c0_2] : memref<8x128xf32, #tpu.memory_space<vmem>>, vector<8x128xf32>
    %cst = arith.constant dense<0.000000e+00> : vector<16x128xf32>
    %2 = tpu.matmul %0, %1, %cst {dimension_numbers = #tpu.dot_dimension_numbers<[1], [0], [0], [1], [0, 0, 1, 1], [], []>} : vector<16x8xf32>, vector<8x128xf32>, vector<16x128xf32> -> vector<16x128xf32>
    %c0_3 = arith.constant 0 : index
    %c0_4 = arith.constant 0 : index
    %3 = vector.load %arg6[%c0_3, %c0_4] : memref<1x128xf32, #tpu.memory_space<vmem>>, vector<1x128xf32>
    %4 = vector.broadcast %3 : vector<1x128xf32> to vector<16x128xf32>
    %5 = arith.addf %2, %4 : vector<16x128xf32>
    %c0_5 = arith.constant 0 : index
    %c0_6 = arith.constant 0 : index
    %6 = vector.load %arg2[%c0_5, %c0_6] : memref<16x4xf32, #tpu.memory_space<vmem>>, vector<16x4xf32>
    %c0_7 = arith.constant 0 : index
    %c0_8 = arith.constant 0 : index
    %7 = vector.load %arg7[%c0_7, %c0_8] : memref<4x16xf32, #tpu.memory_space<vmem>>, vector<4x16xf32>
    %cst_9 = arith.constant dense<0.000000e+00> : vector<16x16xf32>
    %8 = tpu.matmul %6, %7, %cst_9 {dimension_numbers = #tpu.dot_dimension_numbers<[1], [0], [0], [1], [0, 0, 1, 1], [], []>} : vector<16x4xf32>, vector<4x16xf32>, vector<16x16xf32> -> vector<16x16xf32>
    %c0_10 = arith.constant 0 : index
    %c0_11 = arith.constant 0 : index
    %9 = vector.load %arg8[%c0_10, %c0_11] : memref<1x16xf32, #tpu.memory_space<vmem>>, vector<1x16xf32>
    %10 = vector.broadcast %9 : vector<1x16xf32> to vector<16x16xf32>
    %11 = arith.addf %8, %10 : vector<16x16xf32>
    %c0_12 = arith.constant 0 : index
    %c0_13 = arith.constant 0 : index
    %12 = vector.load %arg11[%c0_12, %c0_13] : memref<16x128xf32, #tpu.memory_space<vmem>>, vector<16x128xf32>
    %cst_14 = arith.constant dense<0.000000e+00> : vector<16x128xf32>
    %13 = tpu.matmul %11, %12, %cst_14 {dimension_numbers = #tpu.dot_dimension_numbers<[1], [0], [0], [1], [0, 0, 1, 1], [], []>} : vector<16x16xf32>, vector<16x128xf32>, vector<16x128xf32> -> vector<16x128xf32>
    %c0_15 = arith.constant 0 : index
    %c0_16 = arith.constant 0 : index
    %14 = vector.load %arg12[%c0_15, %c0_16] : memref<1x128xf32, #tpu.memory_space<vmem>>, vector<1x128xf32>
    %15 = vector.broadcast %14 : vector<1x128xf32> to vector<16x128xf32>
    %16 = arith.addf %13, %15 : vector<16x128xf32>
    %c0_17 = arith.constant 0 : index
    %c0_18 = arith.constant 0 : index
    %17 = vector.load %arg3[%c0_17, %c0_18] : memref<16x16xf32, #tpu.memory_space<vmem>>, vector<16x16xf32>
    %c0_19 = arith.constant 0 : index
    %c0_20 = arith.constant 0 : index
    %18 = vector.load %arg4[%c0_19, %c0_20] : memref<16x16xf32, #tpu.memory_space<vmem>>, vector<16x16xf32>
    %cst_21 = arith.constant dense<0.000000e+00> : vector<16x128xf32>
    %19 = tpu.matmul %17, %5, %cst_21 {dimension_numbers = #tpu.dot_dimension_numbers<[1], [0], [0], [1], [0, 0, 1, 1], [], []>} : vector<16x16xf32>, vector<16x128xf32>, vector<16x128xf32> -> vector<16x128xf32>
    %cst_22 = arith.constant dense<0.000000e+00> : vector<16x128xf32>
    %20 = tpu.matmul %18, %5, %cst_22 {dimension_numbers = #tpu.dot_dimension_numbers<[1], [0], [0], [1], [0, 0, 1, 1], [], []>} : vector<16x16xf32>, vector<16x128xf32>, vector<16x128xf32> -> vector<16x128xf32>
    %c0_23 = arith.constant 0 : index
    %c0_24 = arith.constant 0 : index
    %21 = vector.load %arg9[%c0_23, %c0_24] : memref<128x128xf32, #tpu.memory_space<vmem>>, vector<128x128xf32>
    %cst_25 = arith.constant dense<0.000000e+00> : vector<16x128xf32>
    %22 = tpu.matmul %19, %21, %cst_25 {dimension_numbers = #tpu.dot_dimension_numbers<[1], [0], [0], [1], [0, 0, 1, 1], [], []>} : vector<16x128xf32>, vector<128x128xf32>, vector<16x128xf32> -> vector<16x128xf32>
    %c0_26 = arith.constant 0 : index
    %c0_27 = arith.constant 0 : index
    %23 = vector.load %arg10[%c0_26, %c0_27] : memref<128x128xf32, #tpu.memory_space<vmem>>, vector<128x128xf32>
    %cst_28 = arith.constant dense<0.000000e+00> : vector<16x128xf32>
    %24 = tpu.matmul %20, %23, %cst_28 {dimension_numbers = #tpu.dot_dimension_numbers<[1], [0], [0], [1], [0, 0, 1, 1], [], []>} : vector<16x128xf32>, vector<128x128xf32>, vector<16x128xf32> -> vector<16x128xf32>
    %25 = arith.addf %22, %24 : vector<16x128xf32>
    %26 = arith.addf %25, %16 : vector<16x128xf32>
    %cst_29 = arith.constant 0.000000e+00 : f32
    %27 = vector.broadcast %cst_29 : f32 to vector<16x128xf32>
    %28 = arith.maximumf %26, %27 : vector<16x128xf32>
    %c0_30 = arith.constant 0 : index
    %c0_31 = arith.constant 0 : index
    %29 = vector.load %arg13[%c0_30, %c0_31] : memref<128x128xf32, #tpu.memory_space<vmem>>, vector<128x128xf32>
    %cst_32 = arith.constant dense<0.000000e+00> : vector<16x128xf32>
    %30 = tpu.matmul %28, %29, %cst_32 {dimension_numbers = #tpu.dot_dimension_numbers<[1], [0], [0], [1], [0, 0, 1, 1], [], []>} : vector<16x128xf32>, vector<128x128xf32>, vector<16x128xf32> -> vector<16x128xf32>
    %c0_33 = arith.constant 0 : index
    %c0_34 = arith.constant 0 : index
    %31 = vector.load %arg14[%c0_33, %c0_34] : memref<1x128xf32, #tpu.memory_space<vmem>>, vector<1x128xf32>
    %32 = vector.broadcast %31 : vector<1x128xf32> to vector<16x128xf32>
    %33 = arith.addf %30, %32 : vector<16x128xf32>
    %34 = vector.extract_strided_slice %33 {offsets = [0, 0], sizes = [16, 64], strides = [1, 1]} : vector<16x128xf32> to vector<16x64xf32>
    %cst_35 = arith.constant dense<0.000000e+00> : vector<16x64xf32>
    %35 = tpu.matmul %18, %34, %cst_35 {dimension_numbers = #tpu.dot_dimension_numbers<[0], [0], [1], [1], [0, 1, 1, 1], [], []>} : vector<16x16xf32>, vector<16x64xf32>, vector<16x64xf32> -> vector<16x64xf32>
    %36 = vector.extract_strided_slice %33 {offsets = [0, 64], sizes = [16, 64], strides = [1, 1]} : vector<16x128xf32> to vector<16x64xf32>
    %cst_36 = arith.constant dense<0.000000e+00> : vector<16x64xf32>
    %37 = tpu.matmul %17, %36, %cst_36 {dimension_numbers = #tpu.dot_dimension_numbers<[0], [0], [1], [1], [0, 1, 1, 1], [], []>} : vector<16x16xf32>, vector<16x64xf32>, vector<16x64xf32> -> vector<16x64xf32>
    %38 = arith.addf %35, %37 : vector<16x64xf32>
    %c0_37 = arith.constant 0 : index
    %c0_38 = arith.constant 0 : index
    %39 = vector.load %arg15[%c0_37, %c0_38] : memref<64x128xf32, #tpu.memory_space<vmem>>, vector<64x128xf32>
    %cst_39 = arith.constant dense<0.000000e+00> : vector<16x128xf32>
    %40 = tpu.matmul %38, %39, %cst_39 {dimension_numbers = #tpu.dot_dimension_numbers<[1], [0], [0], [1], [0, 0, 1, 1], [], []>} : vector<16x64xf32>, vector<64x128xf32>, vector<16x128xf32> -> vector<16x128xf32>
    %c0_40 = arith.constant 0 : index
    %c0_41 = arith.constant 0 : index
    %41 = vector.load %arg16[%c0_40, %c0_41] : memref<128x128xf32, #tpu.memory_space<vmem>>, vector<128x128xf32>
    %cst_42 = arith.constant dense<0.000000e+00> : vector<16x128xf32>
    %42 = tpu.matmul %5, %41, %cst_42 {dimension_numbers = #tpu.dot_dimension_numbers<[1], [0], [0], [1], [0, 0, 1, 1], [], []>} : vector<16x128xf32>, vector<128x128xf32>, vector<16x128xf32> -> vector<16x128xf32>
    %43 = arith.addf %40, %42 : vector<16x128xf32>
    %c0_43 = arith.constant 0 : index
    %c0_44 = arith.constant 0 : index
    %44 = vector.load %arg17[%c0_43, %c0_44] : memref<1x128xf32, #tpu.memory_space<vmem>>, vector<1x128xf32>
    %45 = vector.broadcast %44 : vector<1x128xf32> to vector<16x128xf32>
    %46 = arith.addf %43, %45 : vector<16x128xf32>
    %cst_45 = arith.constant 0.000000e+00 : f32
    %47 = vector.broadcast %cst_45 : f32 to vector<16x128xf32>
    %48 = arith.maximumf %46, %47 : vector<16x128xf32>
    %c0_46 = arith.constant 0 : index
    %c0_47 = arith.constant 0 : index
    %49 = vector.load %arg18[%c0_46, %c0_47] : memref<128x128xf32, #tpu.memory_space<vmem>>, vector<128x128xf32>
    %cst_48 = arith.constant dense<0.000000e+00> : vector<16x128xf32>
    %50 = tpu.matmul %48, %49, %cst_48 {dimension_numbers = #tpu.dot_dimension_numbers<[1], [0], [0], [1], [0, 0, 1, 1], [], []>} : vector<16x128xf32>, vector<128x128xf32>, vector<16x128xf32> -> vector<16x128xf32>
    %c0_49 = arith.constant 0 : index
    %c0_50 = arith.constant 0 : index
    %51 = vector.load %arg19[%c0_49, %c0_50] : memref<1x128xf32, #tpu.memory_space<vmem>>, vector<1x128xf32>
    %52 = vector.broadcast %51 : vector<1x128xf32> to vector<16x128xf32>
    %53 = arith.addf %50, %52 : vector<16x128xf32>
    %54 = arith.addf %5, %53 : vector<16x128xf32>
    %c0_51 = arith.constant 0 : index
    %c0_52 = arith.constant 0 : index
    %55 = vector.load %arg3[%c0_51, %c0_52] : memref<16x16xf32, #tpu.memory_space<vmem>>, vector<16x16xf32>
    %c0_53 = arith.constant 0 : index
    %c0_54 = arith.constant 0 : index
    %56 = vector.load %arg4[%c0_53, %c0_54] : memref<16x16xf32, #tpu.memory_space<vmem>>, vector<16x16xf32>
    %cst_55 = arith.constant dense<0.000000e+00> : vector<16x128xf32>
    %57 = tpu.matmul %55, %54, %cst_55 {dimension_numbers = #tpu.dot_dimension_numbers<[1], [0], [0], [1], [0, 0, 1, 1], [], []>} : vector<16x16xf32>, vector<16x128xf32>, vector<16x128xf32> -> vector<16x128xf32>
    %cst_56 = arith.constant dense<0.000000e+00> : vector<16x128xf32>
    %58 = tpu.matmul %56, %54, %cst_56 {dimension_numbers = #tpu.dot_dimension_numbers<[1], [0], [0], [1], [0, 0, 1, 1], [], []>} : vector<16x16xf32>, vector<16x128xf32>, vector<16x128xf32> -> vector<16x128xf32>
    %c0_57 = arith.constant 0 : index
    %c0_58 = arith.constant 0 : index
    %59 = vector.load %arg9[%c0_57, %c0_58] : memref<128x128xf32, #tpu.memory_space<vmem>>, vector<128x128xf32>
    %cst_59 = arith.constant dense<0.000000e+00> : vector<16x128xf32>
    %60 = tpu.matmul %57, %59, %cst_59 {dimension_numbers = #tpu.dot_dimension_numbers<[1], [0], [0], [1], [0, 0, 1, 1], [], []>} : vector<16x128xf32>, vector<128x128xf32>, vector<16x128xf32> -> vector<16x128xf32>
    %c0_60 = arith.constant 0 : index
    %c0_61 = arith.constant 0 : index
    %61 = vector.load %arg10[%c0_60, %c0_61] : memref<128x128xf32, #tpu.memory_space<vmem>>, vector<128x128xf32>
    %cst_62 = arith.constant dense<0.000000e+00> : vector<16x128xf32>
    %62 = tpu.matmul %58, %61, %cst_62 {dimension_numbers = #tpu.dot_dimension_numbers<[1], [0], [0], [1], [0, 0, 1, 1], [], []>} : vector<16x128xf32>, vector<128x128xf32>, vector<16x128xf32> -> vector<16x128xf32>
    %63 = arith.addf %60, %62 : vector<16x128xf32>
    %64 = arith.addf %63, %16 : vector<16x128xf32>
    %cst_63 = arith.constant 0.000000e+00 : f32
    %65 = vector.broadcast %cst_63 : f32 to vector<16x128xf32>
    %66 = arith.maximumf %64, %65 : vector<16x128xf32>
    %c0_64 = arith.constant 0 : index
    %c0_65 = arith.constant 0 : index
    %67 = vector.load %arg13[%c0_64, %c0_65] : memref<128x128xf32, #tpu.memory_space<vmem>>, vector<128x128xf32>
    %cst_66 = arith.constant dense<0.000000e+00> : vector<16x128xf32>
    %68 = tpu.matmul %66, %67, %cst_66 {dimension_numbers = #tpu.dot_dimension_numbers<[1], [0], [0], [1], [0, 0, 1, 1], [], []>} : vector<16x128xf32>, vector<128x128xf32>, vector<16x128xf32> -> vector<16x128xf32>
    %c0_67 = arith.constant 0 : index
    %c0_68 = arith.constant 0 : index
    %69 = vector.load %arg14[%c0_67, %c0_68] : memref<1x128xf32, #tpu.memory_space<vmem>>, vector<1x128xf32>
    %70 = vector.broadcast %69 : vector<1x128xf32> to vector<16x128xf32>
    %71 = arith.addf %68, %70 : vector<16x128xf32>
    %72 = vector.extract_strided_slice %71 {offsets = [0, 0], sizes = [16, 64], strides = [1, 1]} : vector<16x128xf32> to vector<16x64xf32>
    %cst_69 = arith.constant dense<0.000000e+00> : vector<16x64xf32>
    %73 = tpu.matmul %56, %72, %cst_69 {dimension_numbers = #tpu.dot_dimension_numbers<[0], [0], [1], [1], [0, 1, 1, 1], [], []>} : vector<16x16xf32>, vector<16x64xf32>, vector<16x64xf32> -> vector<16x64xf32>
    %74 = vector.extract_strided_slice %71 {offsets = [0, 64], sizes = [16, 64], strides = [1, 1]} : vector<16x128xf32> to vector<16x64xf32>
    %cst_70 = arith.constant dense<0.000000e+00> : vector<16x64xf32>
    %75 = tpu.matmul %55, %74, %cst_70 {dimension_numbers = #tpu.dot_dimension_numbers<[0], [0], [1], [1], [0, 1, 1, 1], [], []>} : vector<16x16xf32>, vector<16x64xf32>, vector<16x64xf32> -> vector<16x64xf32>
    %76 = arith.addf %73, %75 : vector<16x64xf32>
    %c0_71 = arith.constant 0 : index
    %c0_72 = arith.constant 0 : index
    %77 = vector.load %arg15[%c0_71, %c0_72] : memref<64x128xf32, #tpu.memory_space<vmem>>, vector<64x128xf32>
    %cst_73 = arith.constant dense<0.000000e+00> : vector<16x128xf32>
    %78 = tpu.matmul %76, %77, %cst_73 {dimension_numbers = #tpu.dot_dimension_numbers<[1], [0], [0], [1], [0, 0, 1, 1], [], []>} : vector<16x64xf32>, vector<64x128xf32>, vector<16x128xf32> -> vector<16x128xf32>
    %c0_74 = arith.constant 0 : index
    %c0_75 = arith.constant 0 : index
    %79 = vector.load %arg16[%c0_74, %c0_75] : memref<128x128xf32, #tpu.memory_space<vmem>>, vector<128x128xf32>
    %cst_76 = arith.constant dense<0.000000e+00> : vector<16x128xf32>
    %80 = tpu.matmul %54, %79, %cst_76 {dimension_numbers = #tpu.dot_dimension_numbers<[1], [0], [0], [1], [0, 0, 1, 1], [], []>} : vector<16x128xf32>, vector<128x128xf32>, vector<16x128xf32> -> vector<16x128xf32>
    %81 = arith.addf %78, %80 : vector<16x128xf32>
    %c0_77 = arith.constant 0 : index
    %c0_78 = arith.constant 0 : index
    %82 = vector.load %arg17[%c0_77, %c0_78] : memref<1x128xf32, #tpu.memory_space<vmem>>, vector<1x128xf32>
    %83 = vector.broadcast %82 : vector<1x128xf32> to vector<16x128xf32>
    %84 = arith.addf %81, %83 : vector<16x128xf32>
    %cst_79 = arith.constant 0.000000e+00 : f32
    %85 = vector.broadcast %cst_79 : f32 to vector<16x128xf32>
    %86 = arith.maximumf %84, %85 : vector<16x128xf32>
    %c0_80 = arith.constant 0 : index
    %c0_81 = arith.constant 0 : index
    %87 = vector.load %arg18[%c0_80, %c0_81] : memref<128x128xf32, #tpu.memory_space<vmem>>, vector<128x128xf32>
    %cst_82 = arith.constant dense<0.000000e+00> : vector<16x128xf32>
    %88 = tpu.matmul %86, %87, %cst_82 {dimension_numbers = #tpu.dot_dimension_numbers<[1], [0], [0], [1], [0, 0, 1, 1], [], []>} : vector<16x128xf32>, vector<128x128xf32>, vector<16x128xf32> -> vector<16x128xf32>
    %c0_83 = arith.constant 0 : index
    %c0_84 = arith.constant 0 : index
    %89 = vector.load %arg19[%c0_83, %c0_84] : memref<1x128xf32, #tpu.memory_space<vmem>>, vector<1x128xf32>
    %90 = vector.broadcast %89 : vector<1x128xf32> to vector<16x128xf32>
    %91 = arith.addf %88, %90 : vector<16x128xf32>
    %92 = arith.addf %54, %91 : vector<16x128xf32>
    %c0_85 = arith.constant 0 : index
    %c0_86 = arith.constant 0 : index
    %93 = vector.load %arg3[%c0_85, %c0_86] : memref<16x16xf32, #tpu.memory_space<vmem>>, vector<16x16xf32>
    %c0_87 = arith.constant 0 : index
    %c0_88 = arith.constant 0 : index
    %94 = vector.load %arg4[%c0_87, %c0_88] : memref<16x16xf32, #tpu.memory_space<vmem>>, vector<16x16xf32>
    %cst_89 = arith.constant dense<0.000000e+00> : vector<16x128xf32>
    %95 = tpu.matmul %93, %92, %cst_89 {dimension_numbers = #tpu.dot_dimension_numbers<[1], [0], [0], [1], [0, 0, 1, 1], [], []>} : vector<16x16xf32>, vector<16x128xf32>, vector<16x128xf32> -> vector<16x128xf32>
    %cst_90 = arith.constant dense<0.000000e+00> : vector<16x128xf32>
    %96 = tpu.matmul %94, %92, %cst_90 {dimension_numbers = #tpu.dot_dimension_numbers<[1], [0], [0], [1], [0, 0, 1, 1], [], []>} : vector<16x16xf32>, vector<16x128xf32>, vector<16x128xf32> -> vector<16x128xf32>
    %c0_91 = arith.constant 0 : index
    %c0_92 = arith.constant 0 : index
    %97 = vector.load %arg9[%c0_91, %c0_92] : memref<128x128xf32, #tpu.memory_space<vmem>>, vector<128x128xf32>
    %cst_93 = arith.constant dense<0.000000e+00> : vector<16x128xf32>
    %98 = tpu.matmul %95, %97, %cst_93 {dimension_numbers = #tpu.dot_dimension_numbers<[1], [0], [0], [1], [0, 0, 1, 1], [], []>} : vector<16x128xf32>, vector<128x128xf32>, vector<16x128xf32> -> vector<16x128xf32>
    %c0_94 = arith.constant 0 : index
    %c0_95 = arith.constant 0 : index
    %99 = vector.load %arg10[%c0_94, %c0_95] : memref<128x128xf32, #tpu.memory_space<vmem>>, vector<128x128xf32>
    %cst_96 = arith.constant dense<0.000000e+00> : vector<16x128xf32>
    %100 = tpu.matmul %96, %99, %cst_96 {dimension_numbers = #tpu.dot_dimension_numbers<[1], [0], [0], [1], [0, 0, 1, 1], [], []>} : vector<16x128xf32>, vector<128x128xf32>, vector<16x128xf32> -> vector<16x128xf32>
    %101 = arith.addf %98, %100 : vector<16x128xf32>
    %102 = arith.addf %101, %16 : vector<16x128xf32>
    %cst_97 = arith.constant 0.000000e+00 : f32
    %103 = vector.broadcast %cst_97 : f32 to vector<16x128xf32>
    %104 = arith.maximumf %102, %103 : vector<16x128xf32>
    %c0_98 = arith.constant 0 : index
    %c0_99 = arith.constant 0 : index
    %105 = vector.load %arg13[%c0_98, %c0_99] : memref<128x128xf32, #tpu.memory_space<vmem>>, vector<128x128xf32>
    %cst_100 = arith.constant dense<0.000000e+00> : vector<16x128xf32>
    %106 = tpu.matmul %104, %105, %cst_100 {dimension_numbers = #tpu.dot_dimension_numbers<[1], [0], [0], [1], [0, 0, 1, 1], [], []>} : vector<16x128xf32>, vector<128x128xf32>, vector<16x128xf32> -> vector<16x128xf32>
    %c0_101 = arith.constant 0 : index
    %c0_102 = arith.constant 0 : index
    %107 = vector.load %arg14[%c0_101, %c0_102] : memref<1x128xf32, #tpu.memory_space<vmem>>, vector<1x128xf32>
    %108 = vector.broadcast %107 : vector<1x128xf32> to vector<16x128xf32>
    %109 = arith.addf %106, %108 : vector<16x128xf32>
    %110 = vector.extract_strided_slice %109 {offsets = [0, 0], sizes = [16, 64], strides = [1, 1]} : vector<16x128xf32> to vector<16x64xf32>
    %cst_103 = arith.constant dense<0.000000e+00> : vector<16x64xf32>
    %111 = tpu.matmul %94, %110, %cst_103 {dimension_numbers = #tpu.dot_dimension_numbers<[0], [0], [1], [1], [0, 1, 1, 1], [], []>} : vector<16x16xf32>, vector<16x64xf32>, vector<16x64xf32> -> vector<16x64xf32>
    %112 = vector.extract_strided_slice %109 {offsets = [0, 64], sizes = [16, 64], strides = [1, 1]} : vector<16x128xf32> to vector<16x64xf32>
    %cst_104 = arith.constant dense<0.000000e+00> : vector<16x64xf32>
    %113 = tpu.matmul %93, %112, %cst_104 {dimension_numbers = #tpu.dot_dimension_numbers<[0], [0], [1], [1], [0, 1, 1, 1], [], []>} : vector<16x16xf32>, vector<16x64xf32>, vector<16x64xf32> -> vector<16x64xf32>
    %114 = arith.addf %111, %113 : vector<16x64xf32>
    %c0_105 = arith.constant 0 : index
    %c0_106 = arith.constant 0 : index
    %115 = vector.load %arg15[%c0_105, %c0_106] : memref<64x128xf32, #tpu.memory_space<vmem>>, vector<64x128xf32>
    %cst_107 = arith.constant dense<0.000000e+00> : vector<16x128xf32>
    %116 = tpu.matmul %114, %115, %cst_107 {dimension_numbers = #tpu.dot_dimension_numbers<[1], [0], [0], [1], [0, 0, 1, 1], [], []>} : vector<16x64xf32>, vector<64x128xf32>, vector<16x128xf32> -> vector<16x128xf32>
    %c0_108 = arith.constant 0 : index
    %c0_109 = arith.constant 0 : index
    %117 = vector.load %arg16[%c0_108, %c0_109] : memref<128x128xf32, #tpu.memory_space<vmem>>, vector<128x128xf32>
    %cst_110 = arith.constant dense<0.000000e+00> : vector<16x128xf32>
    %118 = tpu.matmul %92, %117, %cst_110 {dimension_numbers = #tpu.dot_dimension_numbers<[1], [0], [0], [1], [0, 0, 1, 1], [], []>} : vector<16x128xf32>, vector<128x128xf32>, vector<16x128xf32> -> vector<16x128xf32>
    %119 = arith.addf %116, %118 : vector<16x128xf32>
    %c0_111 = arith.constant 0 : index
    %c0_112 = arith.constant 0 : index
    %120 = vector.load %arg17[%c0_111, %c0_112] : memref<1x128xf32, #tpu.memory_space<vmem>>, vector<1x128xf32>
    %121 = vector.broadcast %120 : vector<1x128xf32> to vector<16x128xf32>
    %122 = arith.addf %119, %121 : vector<16x128xf32>
    %cst_113 = arith.constant 0.000000e+00 : f32
    %123 = vector.broadcast %cst_113 : f32 to vector<16x128xf32>
    %124 = arith.maximumf %122, %123 : vector<16x128xf32>
    %c0_114 = arith.constant 0 : index
    %c0_115 = arith.constant 0 : index
    %125 = vector.load %arg18[%c0_114, %c0_115] : memref<128x128xf32, #tpu.memory_space<vmem>>, vector<128x128xf32>
    %cst_116 = arith.constant dense<0.000000e+00> : vector<16x128xf32>
    %126 = tpu.matmul %124, %125, %cst_116 {dimension_numbers = #tpu.dot_dimension_numbers<[1], [0], [0], [1], [0, 0, 1, 1], [], []>} : vector<16x128xf32>, vector<128x128xf32>, vector<16x128xf32> -> vector<16x128xf32>
    %c0_117 = arith.constant 0 : index
    %c0_118 = arith.constant 0 : index
    %127 = vector.load %arg19[%c0_117, %c0_118] : memref<1x128xf32, #tpu.memory_space<vmem>>, vector<1x128xf32>
    %128 = vector.broadcast %127 : vector<1x128xf32> to vector<16x128xf32>
    %129 = arith.addf %126, %128 : vector<16x128xf32>
    %130 = arith.addf %92, %129 : vector<16x128xf32>
    %c0_119 = arith.constant 0 : index
    %c0_120 = arith.constant 0 : index
    %131 = vector.load %arg20[%c0_119, %c0_120] : memref<128x256xf32, #tpu.memory_space<vmem>>, vector<128x256xf32>
    %cst_121 = arith.constant dense<0.000000e+00> : vector<16x256xf32>
    %132 = tpu.matmul %130, %131, %cst_121 {dimension_numbers = #tpu.dot_dimension_numbers<[1], [0], [0], [1], [0, 0, 1, 1], [], []>} : vector<16x128xf32>, vector<128x256xf32>, vector<16x256xf32> -> vector<16x256xf32>
    %c0_122 = arith.constant 0 : index
    %c0_123 = arith.constant 0 : index
    %133 = vector.load %arg21[%c0_122, %c0_123] : memref<1x256xf32, #tpu.memory_space<vmem>>, vector<1x256xf32>
    %134 = vector.broadcast %133 : vector<1x256xf32> to vector<16x256xf32>
    %135 = arith.addf %132, %134 : vector<16x256xf32>
    %136 = vector.extract_strided_slice %135 {offsets = [0, 0], sizes = [16, 128], strides = [1, 1]} : vector<16x256xf32> to vector<16x128xf32>
    %137 = arith.negf %136 : vector<16x128xf32>
    %138 = math.exp %137 : vector<16x128xf32>
    %cst_124 = arith.constant 1.000000e+00 : f32
    %139 = vector.broadcast %cst_124 : f32 to vector<16x128xf32>
    %140 = arith.addf %139, %138 : vector<16x128xf32>
    %141 = arith.divf %139, %140 : vector<16x128xf32>
    %142 = vector.extract_strided_slice %135 {offsets = [0, 128], sizes = [16, 128], strides = [1, 1]} : vector<16x256xf32> to vector<16x128xf32>
    %143 = arith.mulf %141, %142 : vector<16x128xf32>
    %144 = arith.truncf %143 : vector<16x128xf32> to vector<16x128xbf16>
    %c0_125 = arith.constant 0 : index
    %c0_126 = arith.constant 0 : index
    %145 = vector.load %arg22[%c0_125, %c0_126] : memref<16x128xbf16, #tpu.memory_space<vmem>>, vector<16x128xbf16>
    tpu.vector_store %arg22[%c0_125, %c0_126], %144 {strides = array<i32>} : memref<16x128xbf16, #tpu.memory_space<vmem>>, vector<16x128xbf16>,
    return
  }
  func.func @transform_0(%arg0: i32) -> (i32, i32) {
    %c0_i32 = arith.constant 0 : i32
    %c0_i32_0 = arith.constant 0 : i32
    return %arg0, %c0_i32 : i32, i32
  }
  func.func @transform_1(%arg0: i32) -> (i32, i32) {
    %c0_i32 = arith.constant 0 : i32
    %c0_i32_0 = arith.constant 0 : i32
    return %arg0, %c0_i32 : i32, i32
  }
  func.func @transform_2(%arg0: i32) -> (i32, i32) {
    %c0_i32 = arith.constant 0 : i32
    %c0_i32_0 = arith.constant 0 : i32
    return %arg0, %c0_i32 : i32, i32
  }
  func.func @transform_3(%arg0: i32) -> (i32, i32) {
    %c0_i32 = arith.constant 0 : i32
    %c0_i32_0 = arith.constant 0 : i32
    return %arg0, %c0_i32 : i32, i32
  }
  func.func @transform_4(%arg0: i32) -> (i32, i32) {
    %c0_i32 = arith.constant 0 : i32
    %c0_i32_0 = arith.constant 0 : i32
    %c0_i32_1 = arith.constant 0 : i32
    return %c0_i32, %c0_i32_0 : i32, i32
  }
  func.func @transform_5(%arg0: i32) -> (i32, i32) {
    %c0_i32 = arith.constant 0 : i32
    %c0_i32_0 = arith.constant 0 : i32
    %c0_i32_1 = arith.constant 0 : i32
    return %c0_i32, %c0_i32_0 : i32, i32
  }
  func.func @transform_6(%arg0: i32) -> (i32, i32) {
    %c0_i32 = arith.constant 0 : i32
    %c0_i32_0 = arith.constant 0 : i32
    %c0_i32_1 = arith.constant 0 : i32
    return %c0_i32, %c0_i32_0 : i32, i32
  }
  func.func @transform_7(%arg0: i32) -> (i32, i32) {
    %c0_i32 = arith.constant 0 : i32
    %c0_i32_0 = arith.constant 0 : i32
    %c0_i32_1 = arith.constant 0 : i32
    return %c0_i32, %c0_i32_0 : i32, i32
  }
  func.func @transform_8(%arg0: i32) -> (i32, i32) {
    %c0_i32 = arith.constant 0 : i32
    %c0_i32_0 = arith.constant 0 : i32
    %c0_i32_1 = arith.constant 0 : i32
    return %c0_i32, %c0_i32_0 : i32, i32
  }
  func.func @transform_9(%arg0: i32) -> (i32, i32) {
    %c0_i32 = arith.constant 0 : i32
    %c0_i32_0 = arith.constant 0 : i32
    %c0_i32_1 = arith.constant 0 : i32
    return %c0_i32, %c0_i32_0 : i32, i32
  }
  func.func @transform_10(%arg0: i32) -> (i32, i32) {
    %c0_i32 = arith.constant 0 : i32
    %c0_i32_0 = arith.constant 0 : i32
    %c0_i32_1 = arith.constant 0 : i32
    return %c0_i32, %c0_i32_0 : i32, i32
  }
  func.func @transform_11(%arg0: i32) -> (i32, i32) {
    %c0_i32 = arith.constant 0 : i32
    %c0_i32_0 = arith.constant 0 : i32
    %c0_i32_1 = arith.constant 0 : i32
    return %c0_i32, %c0_i32_0 : i32, i32
  }
  func.func @transform_12(%arg0: i32) -> (i32, i32) {
    %c0_i32 = arith.constant 0 : i32
    %c0_i32_0 = arith.constant 0 : i32
    %c0_i32_1 = arith.constant 0 : i32
    return %c0_i32, %c0_i32_0 : i32, i32
  }
  func.func @transform_13(%arg0: i32) -> (i32, i32) {
    %c0_i32 = arith.constant 0 : i32
    %c0_i32_0 = arith.constant 0 : i32
    %c0_i32_1 = arith.constant 0 : i32
    return %c0_i32, %c0_i32_0 : i32, i32
  }
  func.func @transform_14(%arg0: i32) -> (i32, i32) {
    %c0_i32 = arith.constant 0 : i32
    %c0_i32_0 = arith.constant 0 : i32
    %c0_i32_1 = arith.constant 0 : i32
    return %c0_i32, %c0_i32_0 : i32, i32
  }
  func.func @transform_15(%arg0: i32) -> (i32, i32) {
    %c0_i32 = arith.constant 0 : i32
    %c0_i32_0 = arith.constant 0 : i32
    %c0_i32_1 = arith.constant 0 : i32
    return %c0_i32, %c0_i32_0 : i32, i32
  }
  func.func @transform_16(%arg0: i32) -> (i32, i32) {
    %c0_i32 = arith.constant 0 : i32
    %c0_i32_0 = arith.constant 0 : i32
    %c0_i32_1 = arith.constant 0 : i32
    return %c0_i32, %c0_i32_0 : i32, i32
  }
  func.func @transform_17(%arg0: i32) -> (i32, i32) {
    %c0_i32 = arith.constant 0 : i32
    %c0_i32_0 = arith.constant 0 : i32
    %c0_i32_1 = arith.constant 0 : i32
    return %c0_i32, %c0_i32_0 : i32, i32
  }
  func.func @transform_18(%arg0: i32) -> (i32, i32) {
    %c0_i32 = arith.constant 0 : i32
    %c0_i32_0 = arith.constant 0 : i32
    %c0_i32_1 = arith.constant 0 : i32
    return %c0_i32, %c0_i32_0 : i32, i32
  }
  func.func @transform_19(%arg0: i32) -> (i32, i32) {
    %c0_i32 = arith.constant 0 : i32
    %c0_i32_0 = arith.constant 0 : i32
    %c0_i32_1 = arith.constant 0 : i32
    return %c0_i32, %c0_i32_0 : i32, i32
  }
  func.func @transform_20(%arg0: i32) -> (i32, i32) {
    %c0_i32 = arith.constant 0 : i32
    %c0_i32_0 = arith.constant 0 : i32
    %c0_i32_1 = arith.constant 0 : i32
    return %c0_i32, %c0_i32_0 : i32, i32
  }
  func.func @transform_21(%arg0: i32) -> (i32, i32) {
    %c0_i32 = arith.constant 0 : i32
    %c0_i32_0 = arith.constant 0 : i32
    return %arg0, %c0_i32 : i32, i32
  }
}

</mosaic_0001>

<bundles_post_ra>
// kernel: tpu_custom_call.1
= control target key start
LH: loop header
LB: loop body
LE: loop exit
PB: predicated region body
PF: predicated region fallthrough
CT: control target
= control target key end

     0   :  { %s7231_s0 = inlined_call_operand.vmem [shape: f32[32,8], index: 0, kind: input, shape index: {}]   ;;  %s7232_s1 = inlined_call_operand.vmem [shape: f32[32,4], index: 1, kind: input, shape index: {}]   ;;  %s7233_s2 = inlined_call_operand.vmem [shape: f32[32,16], index: 2, kind: input, shape index: {}]   ;;  %s7234_s3 = inlined_call_operand.vmem [shape: f32[32,16], index: 3, kind: input, shape index: {}]   ;;  %s7235_s4 = inlined_call_operand.hbm [shape: f32[8,128], index: 4, kind: input, shape index: {}]   ;;  %s7236_s5 = inlined_call_operand.vmem [shape: f32[1,128], index: 5, kind: input, shape index: {}]   ;;  %s7237_s6 = inlined_call_operand.hbm [shape: f32[4,16], index: 6, kind: input, shape index: {}]   ;;  %s7238_s7 = inlined_call_operand.hbm [shape: f32[1,16], index: 7, kind: input, shape index: {}]   ;;  %s7239_s8 = inlined_call_operand.vmem [shape: f32[128,128], index: 8, kind: input, shape index: {}]   ;;  %s7240_s9 = inlined_call_operand.hbm [shape: f32[128,128], index: 9, kind: input, shape index: {}]   ;;  %s7241_s10 = inlined_call_operand.vmem [shape: f32[16,128], index: 10, kind: input, shape index: {}]   ;;  %s7242_s11 = inlined_call_operand.vmem [shape: f32[1,128], index: 11, kind: input, shape index: {}]   ;;  %s7243_s12 = inlined_call_operand.hbm [shape: f32[128,128], index: 12, kind: input, shape index: {}]   ;;  %s7244_s13 = inlined_call_operand.vmem [shape: f32[1,128], index: 13, kind: input, shape index: {}]   ;;  %s7245_s14 = inlined_call_operand.vmem [shape: f32[64,128], index: 14, kind: input, shape index: {}]   ;;  %s7246_s15 = inlined_call_operand.hbm [shape: f32[128,128], index: 15, kind: input, shape index: {}]   ;;  %s7247_s16 = inlined_call_operand.vmem [shape: f32[1,128], index: 16, kind: input, shape index: {}]   ;;  %s7248_s17 = inlined_call_operand.hbm [shape: f32[128,128], index: 17, kind: input, shape index: {}]   ;;  %s7249_s18 = inlined_call_operand.vmem [shape: f32[1,128], index: 18, kind: input, shape index: {}]   ;;  %s7250_s19 = inlined_call_operand.hbm [shape: f32[128,256], index: 19, kind: input, shape index: {}]   ;;  %s7251_s20 = inlined_call_operand.vmem [shape: f32[1,256], index: 20, kind: input, shape index: {}]   ;;  %s7252_s21 = inlined_call_operand.hbm [shape: bf16[32,128], index: 21, kind: output, shape index: {}]  }
   0x1   :  { %7281 = sst [smem:[#allocation39_spill]] %s7231_s0 }
   0x2   :  { %7282 = sst [smem:[#allocation40_spill]] %s7232_s1 }
   0x3   :  { %7283 = sst [smem:[#allocation41_spill]] %s7233_s2 }
   0x4   :  { %7284 = sst [smem:[#allocation42_spill]] %s7234_s3 }
   0x5   :  { %7285 = sst [smem:[#allocation43_spill]] %s7235_s4 }
   0x6   :  { %7286 = sst [smem:[#allocation44_spill]] %s7236_s5 }
   0x7   :  { %7287 = sst [smem:[#allocation45_spill]] %s7237_s6 }
   0x8   :  { %7288 = sst [smem:[#allocation46_spill]] %s7240_s9 }
   0x9   :  { %7289 = sst [smem:[#allocation47_spill]] %s7249_s18 }
   0xa   :  { %7290 = sst [smem:[#allocation48_spill]] %s7251_s20 }
   0xb   :  { %7291 = sst [smem:[#allocation49_spill]] %s7252_s21 }
   0xc   :  { %26 = vsyncpa [#allocation3], 0 }
   0xd   :  { %27 = vsyncpa [#allocation6], 0 }
   0xe   :  { %28 = vsyncpa [#allocation9], 0 }
   0xf   :  { %29 = vsyncpa [#allocation12], 0 }
  0x10   :  { %30 = vsyncpa [#allocation15], 0 }
  0x11   :  { %31 = vsyncpa [#allocation4], 0 }
  0x12   :  { %33 = vsyncpa [#allocation4 + $0x1], 0  ;;  %s6318_s2 = smov 0   ;;  %s6320_s25 = smov 0  }
  0x13   :  { %s6322_s26 = smov 0   ;;  %s6324_s27 = smov 0  }
  0x14 LB: > { %7292 = sst [smem:[#allocation23_spill]] %s6178_s2  ;;  %s6339_s3 = sadd.s32 4294967295, %s6190_s27   ;;  %s6190_s27 = sphi %s6324_s27, %s7350_s27   ;;  %s6186_s26 = sphi %s6322_s26, %s7353_s26   ;;  %s6182_s25 = sphi %s6320_s25, %s7352_s25   ;;  %s6178_s2 = sphi %s6318_s2, %s7351_s2  }
  0x15   : > { %7293 = sst [smem:[#allocation24_spill]] %s6182_s25  ;;  %s3974_s28 = sadd.s32 4294967294, %s6190_s27  }
  0x16   : > { %7294 = sst [smem:[#allocation25_spill]] %s6186_s26  ;;  %s6343_s29 = sadd.s32 1, %s6190_s27  }
  0x17   : > { %7295 = sst [smem:[#allocation26_spill]] %s6190_s27  ;;  %s507_s0 = sadd.s32 1, %s6186_s26 }
  0x18   : > { %7296 = sst [smem:[#allocation27_spill]] %s6343_s29  ;;  %s504_s4 = ssub.s32 %s6190_s27, %s6343_s29 }
  0x19   : > { %p517_p0 = scmp.ne.s32.totalorder %s6186_s26, %s6182_s25  ;;  %p505_p1 = scmp.eq.s32.totalorder %s504_s4, 0 }
  0x1a   : > { %p518_p2 = scmp.eq.s32.totalorder %s6339_s3, 1  ;;  %p523_p3 = scmp.ne.s32.totalorder %s6182_s25, %s6178_s2 }
  0x1b   : > { %p524_p4 = scmp.eq.s32.totalorder %s3974_s28, 1  ;;  %p3975_p7 = scmp.ge.s32.totalorder %s6190_s27, 1 }
  0x1c   : > { %s6354_s30 = scalar_select %p505_p1, %s6186_s26, %s507_s0  }
  0x1d   : > { %p6356_p5 = por %p518_p2, %p517_p0  ;;  %p6360_p6 = por %p524_p4, %p523_p3 }
  0x1e   : > { %7297 = sst [smem:[#allocation28_spill]] %s6354_s30  ;;  %p531_p8 = scmp.lt.s32.totalorder %s6190_s27, 3 }
  0x1f   : > { %s7298_s5 = scalar_select %p6356_p5, 1, 0 }
  0x20   : > { %s7300_s22 = scalar_select %p6360_p6, 1, 0 }
  0x21   : > { %7299 = sst [smem:[#allocation29_spill]] %s7298_s5  ;;  %p7261_p9 = scmp.eq.s32.totalorder %s6339_s3, 0 }
  0x22   : > { %7301 = sst [smem:[#allocation30_spill]] %s7300_s22  ;;  %p6367_p10 = pnand %p3975_p7, %p531_p8 }
  0x23   : > { %s6192_s1 = smov [#allocation5]   ;;  %s6193_s28 = smov [#allocation8]  }
  0x24   : > { %s7302_s23 = scalar_select %p6367_p10, 1, 0 }
  0x25   : > { %s558_s24 = sshll.u32 %s6192_s1, 4  ;;  %p5768_p11 = pneg %p6367_p10  ;;  %s559_s24 = int_to_ptr.vmem [resolvable:$true] %s558_s24 }
  0x26   : > { %s582_s0 = sshll.u32 %s6193_s28, 4  ;;  %s6194_s30 = smov [#allocation11]   ;;  %s6379_s0 = int_to_ptr.vmem [resolvable:$true] %s582_s0 }
  0x27   : > { %p6375_p12 = pnand %p7261_p9, %p5768_p11  ;;  %s6381_s26 = sshll.u32 %s6194_s30, 4  ;;  %s621_s26 = int_to_ptr.vmem [resolvable:$true] %s6381_s26 }
  0x28   : > { %s7304_s6 = sld [smem:[#allocation45_spill]] }
  0x29   : > { %p6391_p0 = pneg %p6375_p12 }
  0x2e   : > { %s5884_s1 = scalar_lea.hbm %s7304_s6, 64 }
  0x2f   : > { %p5885_p13 = scmp.ne.s32.totalorder %s7304_s6, %s5884_s1  ;;  %p5891_p3 = scmp.lt.u32.totalorder %s5884_s1, %s7304_s6 }
  0x31   : > { %p5887_p1 = pnand %p6391_p0, %p5885_p13 }
  0x33   : > { %p5888_p2 = pneg %p5887_p1 }
  0x35   : > { %p5893_p4 = pnand %p5891_p3, %p5888_p2 }
  0x37   : > { %5896 = shalt.err (!%p5893_p4)
}
  0x38   : > { %s5897_s29 = scalar_lea.vmem %s559_s24, 64  ;;  %p5905_p9 = scmp.lt.s32.totalorder %s559_s24, %s559_s24 }
  0x39   : > { %p5898_p7 = scmp.ne.s32.totalorder %s559_s24, %s5897_s29  ;;  %p5906_p6 = scmp.lt.s32.totalorder %s5897_s29, %s5897_s29 }
  0x3b   : > { %p5900_p8 = pnand %p5898_p7, %p6391_p0  ;;  %p5907_p5 = por %p5906_p6, %p5905_p9 }
  0x3d   : > { %p5901_p11 = pneg %p5900_p8 }
  0x3f   : > { %p5908_p10 = pnand %p5907_p5, %p5901_p11 }
  0x41   : > { %5911 = shalt.err (!%p5908_p10)
}
  0x42   : > { %5774 = dma.hbm_to_vmem [thread:$0]  (!%p6375_p12), %s7304_s6, 64, %s559_s24, [#allocation6]  }
  0x43   : > { %s7306_s9 = sld [smem:[#allocation46_spill]] }
  0x49   : > { %s5912_s1 = scalar_lea.hbm %s7306_s9, 2048 }
  0x4a   : > { %p5913_p13 = scmp.ne.s32.totalorder %s7306_s9, %s5912_s1  ;;  %p5919_p5 = scmp.lt.u32.totalorder %s5912_s1, %s7306_s9 }
  0x4c   : > { %p5915_p1 = pnand %p5913_p13, %p6391_p0 }
  0x4e   : > { %p5916_p6 = pneg %p5915_p1 }
  0x50   : > { %p5921_p9 = pnand %p5919_p5, %p5916_p6 }
  0x52   : > { %5924 = shalt.err (!%p5921_p9)
}
  0x53   : > { %s5925_s24 = scalar_lea.vmem %s6379_s0, 2048  ;;  %p5933_p4 = scmp.lt.s32.totalorder %s6379_s0, %s6379_s0 }
  0x54   : > { %p5926_p10 = scmp.ne.s32.totalorder %s6379_s0, %s5925_s24  ;;  %p5934_p7 = scmp.lt.s32.totalorder %s5925_s24, %s5925_s24 }
  0x56   : > { %p5928_p2 = pnand %p5926_p10, %p6391_p0  ;;  %p5935_p8 = por %p5934_p7, %p5933_p4 }
  0x58   : > { %p5929_p3 = pneg %p5928_p2 }
  0x5a   : > { %p5936_p11 = pnand %p5935_p8, %p5929_p3 }
  0x5c   : > { %5939 = shalt.err (!%p5936_p11)
}
  0x5d   : > { %s6195_s5 = smov 128   ;;  %s6196_s25 = smov 8  }
  0x5e   : > { %5780 = dma.hbm_to_vmem [thread:$0]  (!%p6375_p12), %s7306_s9, 2048, %s6379_s0, [#allocation9], %s6195_s5, %s6195_s5, %s6196_s25  }
  0x5f   : > { %s5940_s1 = scalar_lea.hbm %s7246_s15, 2048 }
  0x60   : > { %p5941_p13 = scmp.ne.s32.totalorder %s7246_s15, %s5940_s1  ;;  %p5947_p5 = scmp.lt.u32.totalorder %s5940_s1, %s7246_s15 }
  0x62   : > { %p5943_p1 = pnand %p5941_p13, %p6391_p0 }
  0x64   : > { %p5944_p6 = pneg %p5943_p1 }
  0x66   : > { %p5949_p9 = pnand %p5947_p5, %p5944_p6 }
  0x68   : > { %5952 = shalt.err (!%p5949_p9)
}
  0x69   : > { %s5953_s2 = scalar_lea.vmem %s621_s26, 2048  ;;  %p5961_p4 = scmp.lt.s32.totalorder %s621_s26, %s621_s26 }
  0x6a   : > { %p5954_p10 = scmp.ne.s32.totalorder %s621_s26, %s5953_s2  ;;  %p5962_p7 = scmp.lt.s32.totalorder %s5953_s2, %s5953_s2 }
  0x6c   : > { %p5956_p2 = pnand %p5954_p10, %p6391_p0  ;;  %p5963_p8 = por %p5962_p7, %p5961_p4 }
  0x6e   : > { %p5957_p3 = pneg %p5956_p2 }
  0x70   : > { %p5964_p11 = pnand %p5963_p8, %p5957_p3 }
  0x72   : > { %5967 = shalt.err (!%p5964_p11)
}
  0x73   : > { %5786 = dma.hbm_to_vmem [thread:$0]  (!%p6375_p12), %s7246_s15, 2048, %s621_s26, [#allocation12], %s6195_s5, %s6195_s5, %s6196_s25  }
  0x74   : > { %s6197_s27 = smov [#allocation2]   ;;  %s6198_s22 = smov [#allocation7]  }
  0x75   : > { %s544_s21 = sshll.u32 %s6197_s27, 4  ;;  %s569_s1 = sshll.u32 %s6198_s22, 4  ;;  %s545_s21 = int_to_ptr.vmem [resolvable:$true] %s544_s21  ;;  %s570_s1 = int_to_ptr.vmem [resolvable:$true] %s569_s1 }
  0x76   : > { %s7307_s24 = sld [smem:[#allocation43_spill]] }
  0x7c   : > { %s5968_s2 = scalar_lea.hbm %s7307_s24, 128 }
  0x7d   : > { %p5969_p13 = scmp.ne.s32.totalorder %s7307_s24, %s5968_s2  ;;  %p5975_p5 = scmp.lt.u32.totalorder %s5968_s2, %s7307_s24 }
  0x7f   : > { %p5971_p1 = pnand %p5969_p13, %p6391_p0 }
  0x81   : > { %p5972_p6 = pneg %p5971_p1 }
  0x83   : > { %p5977_p9 = pnand %p5975_p5, %p5972_p6 }
  0x85   : > { %5980 = shalt.err (!%p5977_p9)
}
  0x86   : > { %s5981_s26 = scalar_lea.vmem %s545_s21, 128  ;;  %p5989_p4 = scmp.lt.s32.totalorder %s545_s21, %s545_s21 }
  0x87   : > { %p5982_p10 = scmp.ne.s32.totalorder %s545_s21, %s5981_s26  ;;  %p5990_p7 = scmp.lt.s32.totalorder %s5981_s26, %s5981_s26 }
  0x89   : > { %p5984_p2 = pnand %p5982_p10, %p6391_p0  ;;  %p5991_p8 = por %p5990_p7, %p5989_p4 }
  0x8b   : > { %p5985_p3 = pneg %p5984_p2 }
  0x8d   : > { %p5992_p11 = pnand %p5991_p8, %p5985_p3 }
  0x8f   : > { %5995 = shalt.err (!%p5992_p11)
}
  0x90   : > { %5771 = dma.hbm_to_vmem [thread:$0]  (!%p6375_p12), %s7307_s24, 128, %s545_s21, [#allocation3]  }
  0x91   : > { %s5996_s27 = scalar_lea.hbm %s7238_s7, 16 }
  0x92   : > { %p5997_p13 = scmp.ne.s32.totalorder %s7238_s7, %s5996_s27  ;;  %p6003_p5 = scmp.lt.u32.totalorder %s5996_s27, %s7238_s7 }
  0x94   : > { %p5999_p1 = pnand %p5997_p13, %p6391_p0 }
  0x96   : > { %p6000_p6 = pneg %p5999_p1 }
  0x98   : > { %p6005_p9 = pnand %p6003_p5, %p6000_p6 }
  0x9a   : > { %6008 = shalt.err (!%p6005_p9)
}
  0x9b   : > { %s6009_s6 = scalar_lea.vmem %s570_s1, 16  ;;  %s6016_s21 = scalar_lea.vmem %s570_s1, 32 }
  0x9c   : > { %p6010_p10 = scmp.ne.s32.totalorder %s570_s1, %s6009_s6  ;;  %p6017_p4 = scmp.lt.s32.totalorder %s570_s1, %s570_s1 }
  0x9d   : > { %p6018_p7 = scmp.lt.s32.totalorder %s6016_s21, %s6009_s6 }
  0x9e   : > { %p6012_p2 = pnand %p6010_p10, %p6391_p0 }
  0x9f   : > { %p6019_p8 = por %p6018_p7, %p6017_p4 }
  0xa0   : > { %p6013_p3 = pneg %p6012_p2 }
  0xa2   : > { %p6020_p11 = pnand %p6019_p8, %p6013_p3 }
  0xa4   : > { %6023 = shalt.err (!%p6020_p11)
}
  0xa5   : > { %5777 = dma.hbm_to_vmem [thread:$0]  (!%p6375_p12), %s7238_s7, 16, %s570_s1, [#allocation6]  }
  0xa6   : > { %s6199_s20 = smov [#allocation10]   ;;  %s6200_s0 = smov [#allocation13]  }
  0xa7   : > { %s601_s18 = sshll.u32 %s6199_s20, 4  ;;  %s636_s27 = sshll.u32 %s6200_s0, 4  ;;  %s602_s18 = int_to_ptr.vmem [resolvable:$true] %s601_s18  ;;  %s637_s27 = int_to_ptr.vmem [resolvable:$true] %s636_s27 }
  0xa8   : > { %s6024_s29 = scalar_lea.hbm %s7243_s12, 2048 }
  0xa9   : > { %p6025_p13 = scmp.ne.s32.totalorder %s7243_s12, %s6024_s29  ;;  %p6031_p5 = scmp.lt.u32.totalorder %s6024_s29, %s7243_s12 }
  0xab   : > { %p6027_p1 = pnand %p6025_p13, %p6391_p0 }
  0xad   : > { %p6028_p6 = pneg %p6027_p1 }
  0xaf   : > { %p6033_p9 = pnand %p6031_p5, %p6028_p6 }
  0xb1   : > { %6036 = shalt.err (!%p6033_p9)
}
  0xb2   : > { %s6037_s1 = scalar_lea.vmem %s602_s18, 2048  ;;  %p6045_p4 = scmp.lt.s32.totalorder %s602_s18, %s602_s18 }
  0xb3   : > { %p6038_p10 = scmp.ne.s32.totalorder %s602_s18, %s6037_s1  ;;  %p6046_p7 = scmp.lt.s32.totalorder %s6037_s1, %s6037_s1 }
  0xb5   : > { %p6040_p2 = pnand %p6038_p10, %p6391_p0  ;;  %p6047_p8 = por %p6046_p7, %p6045_p4 }
  0xb7   : > { %p6041_p3 = pneg %p6040_p2 }
  0xb9   : > { %p6048_p11 = pnand %p6047_p8, %p6041_p3 }
  0xbb   : > { %6051 = shalt.err (!%p6048_p11)
}
  0xbc   : > { %5783 = dma.hbm_to_vmem [thread:$0]  (!%p6375_p12), %s7243_s12, 2048, %s602_s18, [#allocation9], %s6195_s5, %s6195_s5, %s6196_s25  }
  0xbd   : > { %s6052_s30 = scalar_lea.hbm %s7248_s17, 2048 }
  0xbe   : > { %p6053_p13 = scmp.ne.s32.totalorder %s7248_s17, %s6052_s30  ;;  %p6059_p5 = scmp.lt.u32.totalorder %s6052_s30, %s7248_s17 }
  0xc0   : > { %p6055_p1 = pnand %p6053_p13, %p6391_p0 }
  0xc2   : > { %p6056_p6 = pneg %p6055_p1 }
  0xc4   : > { %p6061_p9 = pnand %p6059_p5, %p6056_p6 }
  0xc6   : > { %6064 = shalt.err (!%p6061_p9)
}
  0xc7   : > { %s6065_s26 = scalar_lea.vmem %s637_s27, 2048  ;;  %p6073_p4 = scmp.lt.s32.totalorder %s637_s27, %s637_s27 }
  0xc8   : > { %p6066_p10 = scmp.ne.s32.totalorder %s637_s27, %s6065_s26  ;;  %p6074_p7 = scmp.lt.s32.totalorder %s6065_s26, %s6065_s26 }
  0xca   : > { %p6068_p2 = pnand %p6066_p10, %p6391_p0  ;;  %p6075_p8 = por %p6074_p7, %p6073_p4 }
  0xcc   : > { %p6069_p3 = pneg %p6068_p2 }
  0xce   : > { %p6076_p11 = pnand %p6075_p8, %p6069_p3 }
  0xd0   : > { %6079 = shalt.err (!%p6076_p11)
}
  0xd1   : > { %5789 = dma.hbm_to_vmem [thread:$0]  (!%p6375_p12), %s7248_s17, 2048, %s637_s27, [#allocation12], %s6195_s5, %s6195_s5, %s6196_s25  }
  0xd2   : > { %s6201_s9 = smov [#allocation14]   ;;  %s6080_s30 = scalar_lea.hbm %s7250_s19, 4096 }
  0xd3   : > { %s652_s20 = sshll.u32 %s6201_s9, 4  ;;  %p6081_p13 = scmp.ne.s32.totalorder %s7250_s19, %s6080_s30  ;;  %s653_s20 = int_to_ptr.vmem [resolvable:$true] %s652_s20 }
  0xd4   : > { %p6087_p5 = scmp.lt.u32.totalorder %s6080_s30, %s7250_s19 }
  0xd5   : > { %p6083_p1 = pnand %p6081_p13, %p6391_p0 }
  0xd7   : > { %p6084_p6 = pneg %p6083_p1 }
  0xd9   : > { %p6089_p9 = pnand %p6087_p5, %p6084_p6 }
  0xdb   : > { %6092 = shalt.err (!%p6089_p9)
}
  0xdc   : > { %s6093_s5 = scalar_lea.vmem %s653_s20, 4096  ;;  %p6101_p4 = scmp.lt.s32.totalorder %s653_s20, %s653_s20 }
  0xdd   : > { %p6094_p10 = scmp.ne.s32.totalorder %s653_s20, %s6093_s5  ;;  %p6102_p7 = scmp.lt.s32.totalorder %s6093_s5, %s6093_s5 }
  0xdf   : > { %p6096_p2 = pnand %p6094_p10, %p6391_p0  ;;  %p6103_p8 = por %p6102_p7, %p6101_p4 }
  0xe1   : > { %p6097_p3 = pneg %p6096_p2 }
  0xe3   : > { %p6104_p11 = pnand %p6103_p8, %p6097_p3 }
  0xe5   : > { %6107 = shalt.err (!%p6104_p11)
}
  0xe6   : > { %s6202_s25 = smov 256   ;;  %s6203_s27 = smov 16  }
  0xe7   : > { %5792 = dma.hbm_to_vmem [thread:$0]  (!%p6375_p12), %s7250_s19, 4096, %s653_s20, [#allocation15], %s6202_s25, %s6202_s25, %s6203_s27  }
  0xe8   : > { %p7308_p13 = scmp.ne.s32.totalorder %s7302_s23, 0 }
  0xea   : > { %707 = sbr.rel (%p7308_p13) target bundleno = 5196 (0x144c), region = 104 }
  0xf1   : > { %p7309_p1 = scmp.eq.s32.totalorder %s6339_s3, 0 }
  0xf3   : > { %6153 = dma.done.wait (%p7309_p1), [#allocation3], 128   ;;  %p7310_p0 = pmov %p7309_p1 }
  0xf5   : > { %6155 = vsyncadd (%p7310_p0), [#allocation3], 4294967168  ;;  %p7311_p6 = pmov %p7310_p0 }
  0xf6   : > { %p7312_p5 = pmov %p7310_p0 }
  0xf7   : > { %6157 = dma.done.wait (%p7311_p6), [#allocation6], 80  }
  0xf8   : > { %6159 = vsyncadd (%p7312_p5), [#allocation6], 4294967216  ;;  %p7313_p9 = pmov %p7310_p0 }
  0xf9   : > { %p7314_p12 = pmov %p7310_p0 }
  0xfa   : > { %6161 = dma.done.wait (%p7313_p9), [#allocation9], 4096  }
  0xfb   : > { %6163 = vsyncadd (%p7314_p12), [#allocation9], 4294963200  ;;  %p7315_p10 = pmov %p7310_p0 }
  0xfc   : > { %p7316_p2 = pmov %p7310_p0 }
  0xfd   : > { %6165 = dma.done.wait (%p7315_p10), [#allocation12], 4096  }
  0xfe   : > { %6167 = vsyncadd (%p7316_p2), [#allocation12], 4294963200  ;;  %p7317_p3 = pmov %p7310_p0 }
  0xff   : > { %p7318_p4 = pmov %p7310_p0 }
 0x100   : > { %6169 = dma.done.wait (%p7317_p3), [#allocation15], 4096  }
 0x101   : > { %6171 = vsyncadd (%p7318_p4), [#allocation15], 4294963200  ;;  %s3995_s23 = sshll.u32 %s6339_s3, 1  ;;  %vm944_vm0 = vcmask 1043456   ;;  %s7319_s9 = sld [smem:[#allocation39_spill]]  ;;  %vm845_vm1 = vcmask 64512  }
 0x102   : > { %p811_p7 = scmp.lt.s32.totalorder %s3995_s23, 3  ;;  %s7320_s30 = sld [smem:[#allocation40_spill]]  ;;  %v837_v0 = vld [vmem:[#allocation2] sm:$0xff]  ;;  %v929_v1 = vld [vmem:[#allocation5] sm:$0xf]  ;;  %vm937_vm2 = vcmask 31744  }
 0x103   : > { %4421 = vmatprep.subr.mxu0 %v837_v0  ;;  %4426 = vmatprep.subr.msk.mxu1 %vm944_vm0, %v929_v1  ;;  %v1023_v6 = vld [vmem:[%s7241_s10] sm:$0xff]  ;;  %v1024_v7 = vld [vmem:[%s7241_s10 + $0x8] sm:$0xff]  ;;  %s7321_s26 = sld [smem:[#allocation42_spill]]  ;;  %s7322_s1 = sld [smem:[#allocation41_spill]]  ;;  %vm1032_vm3 = vcmask 130048   ;;  %v1299_v27 = vld [vmem:[#allocation8 + $0x18] sm:$0xff] }
 0x104   : > { %s7355_s23 = smov (!%p811_p7, %s3995_s23), 3  ;;  %4422 = vmatpush3.msra.mxu0 %v837_v0  ;;  %4427 = vmatpush3.msk.msra.mxu1 %vm944_vm0, %v929_v1  ;;  %v5104_v8 = vpack.c.bf16 %v1024_v7, %v1023_v6  ;;  %s7324_s22 = sld [smem:[#allocation44_spill]]  ;;  %v4006_v13 = vld [vmem:[#allocation7] ss:$0 sm:$0xff]  ;;  %v1296_v20 = vld [vmem:[#allocation8] sm:$0xff]  ;;  %v1297_v21 = vld [vmem:[#allocation8 + $0x8] sm:$0xff] }
 0x105   : > { %s3996_s4 = sshll.u32 %s7355_s23, 3  ;;  %v6614_v25 = vpack.c.bf16 %v1297_v21, %v1296_v20  ;;  %v1298_v26 = vld [vmem:[#allocation8 + $0x10] sm:$0xff]  ;;  %v1300_v30 = vld [vmem:[#allocation8 + $0x20] sm:$0xff]  ;;  %v1301_v31 = vld [vmem:[#allocation8 + $0x28] sm:$0xff]  ;;  %vm1897_vm4 = vcmask 523264   ;;  %s7332_s6 = sld [smem:[#allocation47_spill]] }
 0x106   : > { %5105 = vmatprep.subr.bf16.mxu0 %v5104_v8  ;;  %v6622_v29 = vpack.c.bf16 %v1299_v27, %v1298_v26  ;;  %v6630_v32 = vpack.c.bf16 %v1301_v31, %v1300_v30  ;;  %v1302_v33 = vld [vmem:[#allocation8 + $0x30] sm:$0xff]  ;;  %v1303_v34 = vld [vmem:[#allocation8 + $0x38] sm:$0xff]  ;;  %v1304_v36 = vld [vmem:[#allocation8 + $0x40] sm:$0xff]  ;;  %s7341_s25 = sld [smem:[#allocation48_spill]]  ;;  %s7342_s27 = sld [smem:[#allocation24_spill]] }
 0x107   : > { %s814_s20 = scalar_lea.vmem %s7319_s9, %s3996_s4  ;;  %v6634_v35 = vpack.c.bf16 %v1303_v34, %v1302_v33  ;;  %v1305_v37 = vld [vmem:[#allocation8 + $0x48] sm:$0xff]  ;;  %v1306_v39 = vld [vmem:[#allocation8 + $0x50] sm:$0xff]  ;;  %v1307_v40 = vld [vmem:[#allocation8 + $0x58] sm:$0xff]  ;;  %s7343_s23 = sld [smem:[#allocation29_spill]] }
 0x108   : > { %s820_s29 = scalar_lea.vmem %s7320_s30, %s3996_s4  ;;  %v835_v2 = vld [vmem:[%s814_s20] sm:$0xff]  ;;  %v836_v3 = vld [vmem:[%s814_s20 + $0x8] sm:$0xff]  ;;  %v6638_v38 = vpack.c.bf16 %v1305_v37, %v1304_v36  ;;  %v6642_v41 = vpack.c.bf16 %v1307_v40, %v1306_v39  ;;  %v1311_v46 = vld [vmem:[#allocation8 + $0x78] sm:$0xff]  ;;  %s4057_s28 = sshll.u32 %s6339_s3, 7 }
 0x109   : > { %v927_v4 = vld [vmem:[%s820_s29] sm:$0xff]  ;;  %v928_v5 = vld [vmem:[%s820_s29 + $0x8] sm:$0xff]  ;;  %4423 = vmatprep.mubr.msk.f32.mxu0 %vm845_vm1, %v835_v2  ;;  %s832_s18 = scalar_lea.vmem %s7321_s26, %s3996_s4  ;;  %s826_s9 = scalar_lea.vmem %s7322_s1, %s3996_s4  ;;  %v1469_v55 = vld [vmem:[#allocation10 + $0x18] sm:$0xff] }
 0x10a   : > { %4428 = vmatprep.mubr.msk.f32.mxu1 %vm937_vm2, %v927_v4  ;;  %4424 = vmatmul.mubr.msk.f32.vlgmr.msra.gmra.mrb[0].mxu0 %vm845_vm1, %v836_v3  ;;  %v6591_v9 = vld [vmem:[%s832_s18] sm:$0xff]  ;;  %v6599_v11 = vld [vmem:[%s832_s18 + $0x8] sm:$0xff]  ;;  %v1473_v61 = vld [vmem:[#allocation10 + $0x38] sm:$0xff]  ;;  %s6204_s4 = smov 64   ;;  %s6206_s3 = smov [#allocation16]  }
 0x10b   : > { %4429 = vmatmul.mubr.msk.f32.vlgmr.msra.gmra.mrb[0].mxu1 %vm937_vm2, %v928_v5  ;;  %5107 = vmatpush3.bf16.msra.mxu0 %v5104_v8  ;;  %v6597_v10 = vld [vmem:[%s826_s9] sm:$0xff]  ;;  %v6617_v28 = vld [vmem:[%s826_s9 + $0x8] sm:$0xff]  ;;  %v1477_v3 = vld [vmem:[#allocation10 + $0x58] sm:$0xff] }
 0x10c   : > { %1685 = vxpose.xlu1.b32.start [1/2] (short) (narrow) %v6591_v9, 16  ;;  %7323 = vst [vmem:[#allocation31_spill] sm:$0xff] %v6597_v10  ;;  %4442 = vmatprep.mubr.msk.f32.mxu1 %vm1032_vm3, %v6597_v10  ;;  %v4003_v12 = vld [vmem:[%s7324_s22] ss:$0 sm:$0xff]  ;;  %v1309_v43 = vld [vmem:[#allocation8 + $0x68] sm:$0xff]  ;;  %v1310_v45 = vld [vmem:[#allocation8 + $0x70] sm:$0xff] }
 0x10d   : > { %v1308_v42 = vld [vmem:[#allocation8 + $0x60] sm:$0xff]  ;;  %v6651_v47 = vpack.c.bf16 %v1311_v46, %v1310_v45  ;;  %v1281_v49 = vld [vmem:[%s7239_s8 + $0x8] sm:$0xff]  ;;  %v1286_v26 = vld [vmem:[%s7239_s8 + $0x30] sm:$0xff]  ;;  %s807_s26 = sand.u32 1, %s7342_s27   ;;  %s7344_s22 = sld [smem:[#allocation49_spill]] }
 0x10e   : > { %v6646_v44 = vpack.c.bf16 %v1309_v43, %v1308_v42  ;;  %v1280_v48 = vld [vmem:[%s7239_s8] sm:$0xff]  ;;  %v1468_v53 = vld [vmem:[#allocation10 + $0x10] sm:$0xff]  ;;  %v1287_v27 = vld [vmem:[%s7239_s8 + $0x38] sm:$0xff]  ;;  %s3994_s18 = sshll.u32 %s807_s26, 3  ;;  %s7188_s29 = scalar_lea.sflag [#allocation4], %s807_s26 }
 0x10f   : > { %v6661_v50 = vpack.c.bf16 %v1281_v49, %v1280_v48  ;;  %v1466_v51 = vld [vmem:[#allocation10] sm:$0xff]  ;;  %v1467_v52 = vld [vmem:[#allocation10 + $0x8] sm:$0xff]  ;;  %v6666_v56 = vpack.c.bf16 %v1469_v55, %v1468_v53  ;;  %v1472_v60 = vld [vmem:[#allocation10 + $0x30] sm:$0xff]  ;;  %v6718_v30 = vpack.c.bf16 %v1287_v27, %v1286_v26  ;;  %s809_s1 = scalar_lea.vmem [#allocation16], %s3994_s18  ;;  %p7345_p11 = scmp.ne.s32.totalorder %s7343_s23, 0 }
 0x110   : > { %1686 = vxpose.xlu1.b32.end [2/2] (short) (narrow) %v6599_v11, 16  ;;  %v6664_v54 = vpack.c.bf16 %v1467_v52, %v1466_v51  ;;  %v1470_v57 = vld [vmem:[#allocation10 + $0x20] sm:$0xff]  ;;  %v1471_v58 = vld [vmem:[#allocation10 + $0x28] sm:$0xff]  ;;  %v6675_v62 = vpack.c.bf16 %v1473_v61, %v1472_v60  ;;  %v1476_v2 = vld [vmem:[#allocation10 + $0x50] sm:$0xff]  ;;  %s3797_s9 = sshll.u32 %s809_s1, 4  ;;  %s7186_s9 = int_to_ptr.vmem [resolvable:$true] %s3797_s9 }
 0x111   : > { %v6671_v59 = vpack.c.bf16 %v1471_v58, %v1470_v57  ;;  %v1474_v63 = vld [vmem:[#allocation10 + $0x40] sm:$0xff]  ;;  %v1475_v0 = vld [vmem:[#allocation10 + $0x48] sm:$0xff]  ;;  %v6683_v4 = vpack.c.bf16 %v1477_v3, %v1476_v2  ;;  %v1290_v36 = vld [vmem:[%s7239_s8 + $0x50] sm:$0xff]  ;;  %s6108_s2 = scalar_lea.vmem %s7186_s9, 128 }
 0x112   : > { %v6679_v1 = vpack.c.bf16 %v1475_v0, %v1474_v63  ;;  %v1478_v5 = vld [vmem:[#allocation10 + $0x60] sm:$0xff]  ;;  %v1479_v6 = vld [vmem:[#allocation10 + $0x68] sm:$0xff]  ;;  %v1294_v45 = vld [vmem:[%s7239_s8 + $0x70] sm:$0xff]  ;;  %p6109_p8 = scmp.ne.s32.totalorder %s7186_s9, %s6108_s2 }
 0x113   : > { %v6687_v7 = vpack.c.bf16 %v1479_v6, %v1478_v5  ;;  %v1284_v21 = vld [vmem:[%s7239_s8 + $0x20] sm:$0xff]  ;;  %v1289_v33 = vld [vmem:[%s7239_s8 + $0x48] sm:$0xff]  ;;  %v1291_v37 = vld [vmem:[%s7239_s8 + $0x58] sm:$0xff]  ;;  %s7184_s30 = scalar_lea.hbm %s7344_s22, %s4057_s28 }
 0x114   : > { %v1288_v31 = vld [vmem:[%s7239_s8 + $0x40] sm:$0xff]  ;;  %v6738_v39 = vpack.c.bf16 %v1291_v37, %v1290_v36  ;;  %v1293_v42 = vld [vmem:[%s7239_s8 + $0x68] sm:$0xff]  ;;  %v1295_v46 = vld [vmem:[%s7239_s8 + $0x78] sm:$0xff]  ;;  %p6110_p13 = pnand %p6109_p8, %p7345_p11 }
 0x115   : > { %v6728_v34 = vpack.c.bf16 %v1289_v33, %v1288_v31  ;;  %v1292_v40 = vld [vmem:[%s7239_s8 + $0x60] sm:$0xff]  ;;  %v6758_v48 = vpack.c.bf16 %v1295_v46, %v1294_v45  ;;  %v1480_v49 = vld [vmem:[#allocation10 + $0x70] sm:$0xff]  ;;  %v1481_v51 = vld [vmem:[#allocation10 + $0x78] sm:$0xff] }
 0x116   : > { %v6748_v43 = vpack.c.bf16 %v1293_v42, %v1292_v40  ;;  %v6763_v52 = vpack.c.bf16 %v1481_v51, %v1480_v49  ;;  %v4010_v53 = vld [vmem:[%s7242_s11] ss:$0 sm:$0xff]  ;;  %v1803_v27 = vld [vmem:[%s7245_s14 + $0x28] sm:$0xff]  ;;  %v1804_v33 = vld [vmem:[%s7245_s14 + $0x30] sm:$0xff]  ;;  %p6111_p1 = pneg %p6110_p13 }
 0x117   : > { %v6779_v3 = vld [vmem:[%s7244_s13] ss:$0 sm:$0xff]  ;;  %v1805_v36 = vld [vmem:[%s7245_s14 + $0x38] sm:$0xff] }
 0x118   : > { %v1802_v26 = vld [vmem:[%s7245_s14 + $0x20] sm:$0xff]  ;;  %v6821_v37 = vpack.c.bf16 %v1805_v36, %v1804_v33 }
 0x119   : > { %v6811_v31 = vpack.c.bf16 %v1803_v27, %v1802_v26  ;;  %v1806_v51 = vld [vmem:[#allocation11] sm:$0xff]  ;;  %v1816_v26 = vld [vmem:[#allocation11 + $0x50] sm:$0xff]  ;;  %v1817_v27 = vld [vmem:[#allocation11 + $0x58] sm:$0xff] }
 0x11a   : > { %7328 = vst [vmem:[#allocation35_spill] sm:$0xff] %v6821_v37  ;;  %v6862_v33 = vpack.c.bf16 %v1817_v27, %v1816_v26  ;;  %v1818_v36 = vld [vmem:[#allocation11 + $0x60] sm:$0xff]  ;;  %v1995_v26 = vld [vmem:[#allocation13 + $0x28] sm:$0xff] }
 0x11b   : > { %7327 = vst [vmem:[#allocation34_spill] sm:$0xff] %v6811_v31 }
 0x1dd   : > { %v4425_v14 = vpop.f32.mrb[0].mxu0 }
 0x1de   : > { %v4430_v15 = vpop.f32.mrb[0].mxu1  ;;  %v6607_v16 = vadd.f32 %v4425_v14, %v4003_v12  ;;  %v918_v18 = vpop.f32.mrb[1].mxu0  ;;  %v1283_v14 = vld [vmem:[%s7239_s8 + $0x18] sm:$0xff] }
 0x1df   : > { %v1020_v17 = vadd.f32 %v4430_v15, %v4006_v13  ;;  %v1014_v19 = vpop.f32.mrb[1].mxu1  ;;  %v6609_v22 = vadd.f32 %v4003_v12, %v918_v18 }
 0x1e0   : > { %v1015_v23 = vadd.f32 %v4006_v13, %v1014_v19  ;;  %v1282_v13 = vld [vmem:[%s7239_s8 + $0x10] sm:$0xff] }
 0x1e1   : > { %v5108_v24 = vpack.c.bf16 %v6607_v16, %v6609_v22  ;;  %v6698_v19 = vpack.c.bf16 %v1283_v14, %v1282_v13 }
 0x1e2   : > { %4435 = vmatprep.mubr.msk.f32.mxu0 %vm1032_vm3, %v1015_v23  ;;  %v1285_v23 = vld [vmem:[%s7239_s8 + $0x28] sm:$0xff] }
 0x1e3   : > { %4436 = vmatmul.mubr.msk.f32.vlgmr.msra.gmra.mrb[2].mxu0 %vm1032_vm3, %v1020_v17  ;;  %5109 = vmatprep.subr.bf16.mxu1 %v5108_v24 }
 0x1e4   : > { %5113 = vmatprep.subr.bf16.mxu0 %v5108_v24  ;;  %5111 = vmatpush3.bf16.msra.mxu1 %v5108_v24 }
 0x1e5   : > { %5115 = vmatpush3.bf16.msra.mxu0 %v5108_v24  ;;  %4449 = vmatprep.mubr.msk.f32.mxu0 %vm1032_vm3, %v6591_v9  ;;  %v6708_v24 = vpack.c.bf16 %v1285_v23, %v1284_v21  ;;  %v1801_v21 = vld [vmem:[%s7245_s14 + $0x18] sm:$0xff] }
 0x1e6   : > { %5117 = vmatprep.subr.bf16.mxu1 %v6614_v25  ;;  %5181 = vmatprep.subr.bf16.mxu0 %v6664_v54 }
 0x1e7   : > { %4443 = vmatmul.mubr.msk.f32.vlgmr.msra.gmra.mrb[2].mxu1 %vm1032_vm3, %v6617_v28 }
 0x1e8   : > { %4450 = vmatmul.mubr.msk.f32.vlgmr.msra.gmra.mrb[4].mxu0 %vm1032_vm3, %v6599_v11  ;;  %5119 = vmatpush3.bf16.msra.mxu1 %v6614_v25 }
 0x1e9   : > { %5121 = vmatprep.subr.bf16.mxu1 %v6622_v29  ;;  %5183 = vmatpush3.bf16.msra.mxu0 %v6664_v54 }
 0x1ea   : > { %5185 = vmatprep.subr.bf16.mxu0 %v6666_v56 }
 0x1ec   : > { %5123 = vmatpush3.bf16.msra.mxu1 %v6622_v29 }
 0x1ed   : > { %5125 = vmatprep.subr.bf16.mxu1 %v6630_v32  ;;  %5187 = vmatpush3.bf16.msra.mxu0 %v6666_v56 }
 0x1ee   : > { %5189 = vmatprep.subr.bf16.mxu0 %v6671_v59 }
 0x1f0   : > { %5127 = vmatpush3.bf16.msra.mxu1 %v6630_v32 }
 0x1f1   : > { %5129 = vmatprep.subr.bf16.mxu1 %v6634_v35  ;;  %5191 = vmatpush3.bf16.msra.mxu0 %v6671_v59 }
 0x1f2   : > { %5193 = vmatprep.subr.bf16.mxu0 %v6675_v62 }
 0x1f4   : > { %5131 = vmatpush3.bf16.msra.mxu1 %v6634_v35 }
 0x1f5   : > { %5133 = vmatprep.subr.bf16.mxu1 %v6638_v38  ;;  %5195 = vmatpush3.bf16.msra.mxu0 %v6675_v62 }
 0x1f6   : > { %5197 = vmatprep.subr.bf16.mxu0 %v6679_v1 }
 0x1f8   : > { %5135 = vmatpush3.bf16.msra.mxu1 %v6638_v38 }
 0x1f9   : > { %5137 = vmatprep.subr.bf16.mxu1 %v6642_v41  ;;  %5199 = vmatpush3.bf16.msra.mxu0 %v6679_v1 }
 0x1fa   : > { %5201 = vmatprep.subr.bf16.mxu0 %v6683_v4 }
 0x1fc   : > { %5139 = vmatpush3.bf16.msra.mxu1 %v6642_v41 }
 0x1fd   : > { %5141 = vmatprep.subr.bf16.mxu1 %v6646_v44  ;;  %5203 = vmatpush3.bf16.msra.mxu0 %v6683_v4 }
 0x1fe   : > { %5205 = vmatprep.subr.bf16.mxu0 %v6687_v7 }
 0x200   : > { %5143 = vmatpush3.bf16.msra.mxu1 %v6646_v44 }
 0x201   : > { %5145 = vmatprep.subr.bf16.mxu1 %v6651_v47  ;;  %5207 = vmatpush3.bf16.msra.mxu0 %v6687_v7 }
 0x202   : > { %5209 = vmatprep.subr.bf16.mxu0 %v6763_v52 }
 0x204   : > { %5147 = vmatpush3.bf16.msra.mxu1 %v6651_v47 }
 0x205   : > { %5149 = vmatprep.subr.bf16.mxu1 %v6661_v50  ;;  %5211 = vmatpush3.bf16.msra.mxu0 %v6763_v52 }
 0x2b6   : > { %v4437_v8 = vpop.f32.mrb[2].mxu0 }
 0x2b7   : > { %v1105_v12 = vpop.f32.mrb[3].mxu0  ;;  %v6770_v55 = vadd.f32 %v4437_v8, %v4010_v53 }
 0x2b8   : > { %v6772_v57 = vadd.f32 %v4010_v53, %v1105_v12  ;;  %v1807_v53 = vld [vmem:[#allocation11 + $0x8] sm:$0xff] }
 0x2b9   : > { %7325 = vst [vmem:[#allocation32_spill] sm:$0xff] %v6770_v55 }
 0x2ba   : > { %v4444_v17 = vpop.f32.mrb[2].mxu1 }
 0x2bb   : > { %v4451_v15 = vpop.f32.mrb[4].mxu0  ;;  %v1190_v20 = vpop.f32.mrb[3].mxu1 }
 0x2bc   : > { %v1271_v18 = vpop.f32.mrb[5].mxu0 }
 0x2bd   : > { %4484 = vmatprep.mubr.f32.mxu1 %v1271_v18  ;;  %v1800_v18 = vld [vmem:[%s7245_s14 + $0x10] sm:$0xff] }
 0x2be   : > { %4485 = vmatmul.mubr.f32.vlgmr.msra.gmra.mrb[4].mxu1 %v4451_v15  ;;  %v1798_v15 = vld [vmem:[%s7245_s14] sm:$0xff]  ;;  %v6800_v23 = vpack.c.bf16 %v1801_v21, %v1800_v18 }
 0x2bf   : > { %5151 = vmatpush3.bf16.msra.mxu1 %v6661_v50  ;;  %4519 = vmatprep.mubr.f32.mxu1 %v1190_v20  ;;  %v1815_v18 = vld [vmem:[#allocation11 + $0x48] sm:$0xff] }
 0x2c0   : > { %5153 = vmatprep.subr.bf16.mxu1 %v6698_v19  ;;  %7326 = vst [vmem:[#allocation33_spill] sm:$0xff] %v6800_v23 }
 0x2c3   : > { %5155 = vmatpush3.bf16.msra.mxu1 %v6698_v19 }
 0x2c4   : > { %5157 = vmatprep.subr.bf16.mxu1 %v6708_v24 }
 0x2c7   : > { %5159 = vmatpush3.bf16.msra.mxu1 %v6708_v24 }
 0x2c8   : > { %5161 = vmatprep.subr.bf16.mxu1 %v6718_v30 }
 0x2cb   : > { %5163 = vmatpush3.bf16.msra.mxu1 %v6718_v30 }
 0x2cc   : > { %5165 = vmatprep.subr.bf16.mxu1 %v6728_v34 }
 0x2cf   : > { %5167 = vmatpush3.bf16.msra.mxu1 %v6728_v34 }
 0x2d0   : > { %5169 = vmatprep.subr.bf16.mxu1 %v6738_v39 }
 0x2d3   : > { %5171 = vmatpush3.bf16.msra.mxu1 %v6738_v39 }
 0x2d4   : > { %5173 = vmatprep.subr.bf16.mxu1 %v6748_v43 }
 0x2d7   : > { %5175 = vmatpush3.bf16.msra.mxu1 %v6748_v43 }
 0x2d8   : > { %5177 = vmatprep.subr.bf16.mxu1 %v6758_v48 }
 0x2db   : > { %5179 = vmatpush3.bf16.msra.mxu1 %v6758_v48 }
 0x2de   : > { %4520 = vmatmul.mubr.f32.vlgmr.msra.gmra.mrb[4].mxu1 %v4444_v17  ;;  %v1799_v17 = vld [vmem:[%s7245_s14 + $0x8] sm:$0xff] }
 0x2df   : > { %v6795_v20 = vpack.c.bf16 %v1799_v17, %v1798_v15  ;;  %v1814_v17 = vld [vmem:[#allocation11 + $0x40] sm:$0xff] }
 0x2e0   : > { %v6858_v21 = vpack.c.bf16 %v1815_v18, %v1814_v17  ;;  %v1994_v18 = vld [vmem:[#allocation13 + $0x20] sm:$0xff] }
 0x2e1   : > { %5253 = vmatprep.subr.bf16.mxu1 %v6795_v20  ;;  %v6887_v27 = vpack.c.bf16 %v1995_v26, %v1994_v18  ;;  %v2002_v26 = vld [vmem:[#allocation13 + $0x60] sm:$0xff] }
 0x2e2   : > { %5255 = vmatpush3.bf16.msra.mxu1 %v6795_v20 }
 0x2e3   : > { %5257 = vmatprep.subr.bf16.mxu1 %v6800_v23 }
 0x2e6   : > { %5259 = vmatpush3.bf16.msra.mxu1 %v6800_v23 }
 0x2e7   : > { %5261 = vmatprep.subr.bf16.mxu1 %v6811_v31 }
 0x2ea   : > { %5263 = vmatpush3.bf16.msra.mxu1 %v6811_v31 }
 0x2eb   : > { %5265 = vmatprep.subr.bf16.mxu1 %v6821_v37 }
 0x2ee   : > { %5267 = vmatpush3.bf16.msra.mxu1 %v6821_v37 }
 0x3b1   : > { %v4521_v58 = vpop.f32.mrb[4].mxu1 }
 0x3b2   : > { %v1463_v60 = vadd.f32 %v4521_v58, %v6770_v55  ;;  %v1453_v61 = vpop.f32.mrb[5].mxu1  ;;  %v6830_v58 = vpop.trf.xlu1 }
 0x3b3   : > { %v1462_v63 = vadd.f32 %v1453_v61, %v6772_v57 }
 0x3b4   : > { %v1465_v2 = vmax.f32 %v1463_v60, 0.0  ;;  %v6832_v60 = vpack.c.bf16 %v1807_v53, %v1806_v51  ;;  %v1990_v53 = vld [vmem:[#allocation13] sm:$0xff] }
 0x3b5   : > { %v1464_v0 = vmax.f32 %v1462_v63, 0.0  ;;  %v1808_v63 = vld [vmem:[#allocation11 + $0x10] sm:$0xff] }
 0x3b7   : > { %4554 = vmatprep.mubr.f32.mxu0 %v1464_v0  ;;  %v1809_v0 = vld [vmem:[#allocation11 + $0x18] sm:$0xff] }
 0x3b8   : > { %4555 = vmatmul.mubr.f32.vlgmr.msra.gmra.mrb[6].mxu0 %v1465_v2  ;;  %v6841_v2 = vpop.trf.xlu1 }
 0x48b   : > { %v4556_v5 = vpop.f32.mrb[6].mxu0 }
 0x48c   : > { %v1561_v6 = vadd.f32 %v4556_v5, %v6779_v3  ;;  %v1555_v8 = vpop.f32.mrb[7].mxu0  ;;  %v6843_v5 = vpack.c.bf16 %v1809_v0, %v1808_v63  ;;  %v1991_v63 = vld [vmem:[#allocation13 + $0x8] sm:$0xff] }
 0x48d   : > { %v1556_v12 = vadd.f32 %v6779_v3, %v1555_v8  ;;  %v1811_v8 = vld [vmem:[#allocation11 + $0x28] sm:$0xff]  ;;  %v6878_v0 = vpack.c.bf16 %v1991_v63, %v1990_v53 }
 0x48e   : > { %v1999_v53 = vld [vmem:[#allocation13 + $0x48] sm:$0xff] }
 0x48f   : > { %v5216_v13 = vpack.c.bf16 %v1561_v6, %v1556_v12  ;;  %v5861_v14 = vpack.i.bf16 %v1561_v6, %v1556_v12  ;;  %v1810_v6 = vld [vmem:[#allocation11 + $0x20] sm:$0xff]  ;;  %5269 = vmatprep.subr.bf16.mxu1 %v6878_v0 }
 0x490   : > { %v6850_v12 = vpack.c.bf16 %v1811_v8, %v1810_v6  ;;  %v1992_v6 = vld [vmem:[#allocation13 + $0x10] sm:$0xff]  ;;  %v1993_v8 = vld [vmem:[#allocation13 + $0x18] sm:$0xff] }
 0x491   : > { %5862 = vrot.lane.b32.xlu0 %v5861_v14, %s6204_s4  ;;  %v1813_v14 = vld [vmem:[#allocation11 + $0x38] sm:$0xff]  ;;  %v6881_v17 = vpack.c.bf16 %v1993_v8, %v1992_v6  ;;  %v2000_v6 = vld [vmem:[#allocation13 + $0x50] sm:$0xff] }
 0x492   : > { %v2001_v8 = vld [vmem:[#allocation13 + $0x58] sm:$0xff] }
 0x4af   : > { %1564 = vxpose.xlu0.b32.start [1/2] (short) (narrow) %v6597_v10, 16 }
 0x4b3   : > { %1565 = vxpose.xlu0.b32.end [2/2] (short) (narrow) %v6617_v28, 16 }
 0x503   : > { %v5863_v40 = vpop.permute.xlu0 %5862 }
 0x504   : > { %v5865_v42 = vunpack.i.h.bf16 %v5863_v40  ;;  %v5864_v45 = vunpack.i.l.bf16 %v5863_v40  ;;  %v1819_v40 = vld [vmem:[#allocation11 + $0x68] sm:$0xff] }
 0x506   : > { %v5212_v46 = vpack.c.bf16 %v5865_v42, %v5864_v45  ;;  %v6866_v42 = vpack.c.bf16 %v1819_v40, %v1818_v36  ;;  %v1820_v45 = vld [vmem:[#allocation11 + $0x70] sm:$0xff]  ;;  %v1997_v40 = vld [vmem:[#allocation13 + $0x38] sm:$0xff] }
 0x507   : > { %v1996_v36 = vld [vmem:[#allocation13 + $0x30] sm:$0xff] }
 0x508   : > { %5213 = vmatprep.subr.bf16.mxu0 %v5212_v46 }
 0x509   : > { %5215 = vmatpush3.bf16.msra.mxu0 %v5212_v46  ;;  %v1821_v46 = vld [vmem:[#allocation11 + $0x78] sm:$0xff] }
 0x50a   : > { %5217 = vmatprep.subr.bf16.mxu0 %v5216_v13  ;;  %v6870_v51 = vpack.c.bf16 %v1821_v46, %v1820_v45  ;;  %v6891_v45 = vpack.c.bf16 %v1997_v40, %v1996_v36  ;;  %v1998_v46 = vld [vmem:[#allocation13 + $0x40] sm:$0xff]  ;;  %v2003_v36 = vld [vmem:[#allocation13 + $0x68] sm:$0xff] }
 0x50b   : > { %v6895_v63 = vpack.c.bf16 %v1999_v53, %v1998_v46  ;;  %v6904_v40 = vpack.c.bf16 %v2003_v36, %v2002_v26  ;;  %v2004_v46 = vld [vmem:[#allocation13 + $0x70] sm:$0xff]  ;;  %v2005_v53 = vld [vmem:[#allocation13 + $0x78] sm:$0xff]  ;;  %v6916_v26 = vld [vmem:[%s7247_s16] ss:$0 sm:$0xff] }
 0x50d   : > { %7330 = vst [vmem:[#allocation37_spill] sm:$0xff] %v6904_v40 }
 0x52f   : > { %v6826_v49 = vpop.trf.xlu0 }
 0x530   : > { %4561 = vmatprep.mubr.msk.f32.mxu0 %vm1032_vm3, %v6826_v49 }
 0x533   : > { %v6834_v61 = vpop.trf.xlu0 }
 0x534   : > { %4562 = vmatmul.mubr.msk.f32.vlgmr.msra.gmra.mrb[8].mxu0 %vm1032_vm3, %v6834_v61 }
 0x535   : > { %5219 = vmatpush3.bf16.msra.mxu0 %v5216_v13  ;;  %4568 = vmatprep.mubr.msk.f32.mxu0 %vm1032_vm3, %v6830_v58  ;;  %v1812_v13 = vld [vmem:[#allocation11 + $0x30] sm:$0xff] }
 0x536   : > { %5221 = vmatprep.subr.bf16.mxu0 %v6832_v60  ;;  %v6854_v15 = vpack.c.bf16 %v1813_v14, %v1812_v13 }
 0x53c   : > { %4569 = vmatmul.mubr.msk.f32.vlgmr.msra.gmra.mrb[8].mxu0 %vm1032_vm3, %v6841_v2 }
 0x53d   : > { %5223 = vmatpush3.bf16.msra.mxu0 %v6832_v60  ;;  %4603 = vmatprep.mubr.f32.mxu0 %v6609_v22 }
 0x53e   : > { %5225 = vmatprep.subr.bf16.mxu0 %v6843_v5 }
 0x541   : > { %5227 = vmatpush3.bf16.msra.mxu0 %v6843_v5 }
 0x542   : > { %5229 = vmatprep.subr.bf16.mxu0 %v6850_v12 }
 0x545   : > { %5231 = vmatpush3.bf16.msra.mxu0 %v6850_v12 }
 0x546   : > { %5233 = vmatprep.subr.bf16.mxu0 %v6854_v15 }
 0x549   : > { %5235 = vmatpush3.bf16.msra.mxu0 %v6854_v15 }
 0x54a   : > { %5237 = vmatprep.subr.bf16.mxu0 %v6858_v21 }
 0x54d   : > { %5239 = vmatpush3.bf16.msra.mxu0 %v6858_v21 }
 0x54e   : > { %5241 = vmatprep.subr.bf16.mxu0 %v6862_v33 }
 0x551   : > { %5243 = vmatpush3.bf16.msra.mxu0 %v6862_v33 }
 0x552   : > { %5245 = vmatprep.subr.bf16.mxu0 %v6866_v42 }
 0x555   : > { %5247 = vmatpush3.bf16.msra.mxu0 %v6866_v42 }
 0x556   : > { %5249 = vmatprep.subr.bf16.mxu0 %v6870_v51 }
 0x559   : > { %5251 = vmatpush3.bf16.msra.mxu0 %v6870_v51 }
 0x55c   : > { %4604 = vmatmul.mubr.f32.vlgmr.msra.gmra.mrb[10].mxu0 %v6607_v16 }
 0x55d   : > { %4664 = vmatprep.mubr.msk.f32.mxu0 %vm1032_vm3, %v6597_v10 }
 0x60f   : > { %v4570_v13 = vpop.f32.mrb[8].mxu0 }
 0x610   : > { %v1789_v14 = vpop.f32.mrb[9].mxu0 }
 0x611   : > { %4622 = vmatprep.mubr.msk.f32.mxu1 %vm1897_vm4, %v1789_v14 }
 0x612   : > { %4623 = vmatmul.mubr.msk.f32.vlgmr.msra.gmra.mrb[6].mxu1 %vm1897_vm4, %v4570_v13  ;;  %v6899_v13 = vpack.c.bf16 %v2001_v8, %v2000_v6  ;;  %v6908_v6 = vpack.c.bf16 %v2005_v53, %v2004_v46 }
 0x613   : > { %5271 = vmatpush3.bf16.msra.mxu1 %v6878_v0 }
 0x614   : > { %5273 = vmatprep.subr.bf16.mxu1 %v6881_v17  ;;  %7329 = vst [vmem:[#allocation36_spill] sm:$0xff] %v6899_v13  ;;  %7331 = vst [vmem:[#allocation38_spill] sm:$0xff] %v6908_v6 }
 0x617   : > { %5275 = vmatpush3.bf16.msra.mxu1 %v6881_v17 }
 0x618   : > { %5277 = vmatprep.subr.bf16.mxu1 %v6887_v27 }
 0x61b   : > { %5279 = vmatpush3.bf16.msra.mxu1 %v6887_v27 }
 0x61c   : > { %5281 = vmatprep.subr.bf16.mxu1 %v6891_v45 }
 0x61f   : > { %5283 = vmatpush3.bf16.msra.mxu1 %v6891_v45 }
 0x620   : > { %5285 = vmatprep.subr.bf16.mxu1 %v6895_v63 }
 0x623   : > { %5287 = vmatpush3.bf16.msra.mxu1 %v6895_v63 }
 0x624   : > { %5289 = vmatprep.subr.bf16.mxu1 %v6899_v13 }
 0x627   : > { %5291 = vmatpush3.bf16.msra.mxu1 %v6899_v13 }
 0x628   : > { %5293 = vmatprep.subr.bf16.mxu1 %v6904_v40 }
 0x62b   : > { %5295 = vmatpush3.bf16.msra.mxu1 %v6904_v40 }
 0x62c   : > { %5297 = vmatprep.subr.bf16.mxu1 %v6908_v6 }
 0x62f   : > { %v4605_v14 = vpop.f32.mrb[10].mxu0  ;;  %5299 = vmatpush3.bf16.msra.mxu1 %v6908_v6 }
 0x630   : > { %v1888_v18 = vpop.f32.mrb[11].mxu0  ;;  %5309 = vmatprep.subr.bf16.mxu1 %v6614_v25 }
 0x6e5   : > { %v4624_v8 = vpop.f32.mrb[6].mxu1 }
 0x6e6   : > { %v1976_v36 = vadd.f32 %v4624_v8, %v4605_v14  ;;  %v1970_v10 = vpop.f32.mrb[7].mxu1 }
 0x6e7   : > { %v1971_v37 = vadd.f32 %v1970_v10, %v1888_v18  ;;  %v6939_v10 = vld [vmem:[%s7332_s6] ss:$0 sm:$0xff]  ;;  %s6112_s6 = sshll.u32 %s6206_s3, 4  ;;  %s6113_s6 = int_to_ptr.vmem [resolvable:$false] %s6112_s6 }
 0x6e8   : > { %v1987_v31 = vadd.f32 %v6916_v26, %v1976_v36  ;;  %s6114_s21 = scalar_lea.vmem %s6113_s6, 256  ;;  %p6115_p0 = scmp.lt.s32.totalorder %s7186_s9, %s6113_s6 }
 0x6e9   : > { %v1986_v46 = vadd.f32 %v6916_v26, %v1971_v37  ;;  %p6116_p6 = scmp.lt.s32.totalorder %s6114_s21, %s6108_s2 }
 0x6ea   : > { %v1989_v23 = vmax.f32 %v1987_v31, 0.0 }
 0x6eb   : > { %v1988_v53 = vmax.f32 %v1986_v46, 0.0  ;;  %p6117_p5 = por %p6116_p6, %p6115_p0 }
 0x6ed   : > { %4657 = vmatprep.mubr.f32.mxu1 %v1988_v53  ;;  %p6118_p9 = pnand %p6117_p5, %p6111_p1 }
 0x6ee   : > { %4658 = vmatmul.mubr.f32.vlgmr.msra.gmra.mrb[8].mxu1 %v1989_v23 }
 0x6ef   : > { %5311 = vmatpush3.bf16.msra.mxu1 %v6614_v25 }
 0x6f0   : > { %5313 = vmatprep.subr.bf16.mxu1 %v6622_v29 }
 0x6f3   : > { %5315 = vmatpush3.bf16.msra.mxu1 %v6622_v29 }
 0x6f4   : > { %5317 = vmatprep.subr.bf16.mxu1 %v6630_v32 }
 0x6f7   : > { %5319 = vmatpush3.bf16.msra.mxu1 %v6630_v32 }
 0x6f8   : > { %5321 = vmatprep.subr.bf16.mxu1 %v6634_v35 }
 0x6fb   : > { %5323 = vmatpush3.bf16.msra.mxu1 %v6634_v35 }
 0x6fc   : > { %5325 = vmatprep.subr.bf16.mxu1 %v6638_v38 }
 0x6ff   : > { %5327 = vmatpush3.bf16.msra.mxu1 %v6638_v38 }
 0x700   : > { %5329 = vmatprep.subr.bf16.mxu1 %v6642_v41 }
 0x703   : > { %5331 = vmatpush3.bf16.msra.mxu1 %v6642_v41 }
 0x704   : > { %5333 = vmatprep.subr.bf16.mxu1 %v6646_v44 }
 0x707   : > { %5335 = vmatpush3.bf16.msra.mxu1 %v6646_v44 }
 0x708   : > { %5337 = vmatprep.subr.bf16.mxu1 %v6651_v47 }
 0x70b   : > { %5339 = vmatpush3.bf16.msra.mxu1 %v6651_v47 }
 0x70c   : > { %5341 = vmatprep.subr.bf16.mxu1 %v6661_v50 }
 0x7c1   : > { %v4659_v23 = vpop.f32.mrb[8].mxu1 }
 0x7c2   : > { %v2085_v31 = vadd.f32 %v4659_v23, %v6939_v10  ;;  %v2079_v37 = vpop.f32.mrb[9].mxu1 }
 0x7c3   : > { %v2080_v14 = vadd.f32 %v6939_v10, %v2079_v37 }
 0x7c4   : > { %v6944_v18 = vadd.f32 %v2085_v31, %v6607_v16 }
 0x7c5   : > { %v6947_v8 = vadd.f32 %v2080_v14, %v6609_v22 }
 0x7c7   : > { %v5300_v36 = vpack.c.bf16 %v6944_v18, %v6947_v8 }
 0x7c9   : > { %5301 = vmatprep.subr.bf16.mxu0 %v5300_v36 }
 0x7ca   : > { %5303 = vmatpush3.bf16.msra.mxu0 %v5300_v36 }
 0x7cb   : > { %5305 = vmatprep.subr.bf16.mxu0 %v5300_v36 }
 0x7cd   : > { %4665 = vmatmul.mubr.msk.f32.vlgmr.msra.gmra.mrb[12].mxu0 %vm1032_vm3, %v6617_v28 }
 0x7ce   : > { %5307 = vmatpush3.bf16.msra.mxu0 %v5300_v36  ;;  %4671 = vmatprep.mubr.msk.f32.mxu0 %vm1032_vm3, %v6591_v9 }
 0x7cf   : > { %5373 = vmatprep.subr.bf16.mxu0 %v6664_v54 }
 0x7d1   : > { %4672 = vmatmul.mubr.msk.f32.vlgmr.msra.gmra.mrb[14].mxu0 %vm1032_vm3, %v6599_v11 }
 0x7d2   : > { %5375 = vmatpush3.bf16.msra.mxu0 %v6664_v54 }
 0x7d3   : > { %5377 = vmatprep.subr.bf16.mxu0 %v6666_v56 }
 0x7d6   : > { %5379 = vmatpush3.bf16.msra.mxu0 %v6666_v56 }
 0x7d7   : > { %5381 = vmatprep.subr.bf16.mxu0 %v6671_v59 }
 0x7da   : > { %5383 = vmatpush3.bf16.msra.mxu0 %v6671_v59 }
 0x7db   : > { %5385 = vmatprep.subr.bf16.mxu0 %v6675_v62 }
 0x7de   : > { %5387 = vmatpush3.bf16.msra.mxu0 %v6675_v62 }
 0x7df   : > { %5389 = vmatprep.subr.bf16.mxu0 %v6679_v1 }
 0x7e2   : > { %5391 = vmatpush3.bf16.msra.mxu0 %v6679_v1 }
 0x7e3   : > { %5393 = vmatprep.subr.bf16.mxu0 %v6683_v4 }
 0x7e6   : > { %5395 = vmatpush3.bf16.msra.mxu0 %v6683_v4 }
 0x7e7   : > { %5397 = vmatprep.subr.bf16.mxu0 %v6687_v7 }
 0x7ea   : > { %5399 = vmatpush3.bf16.msra.mxu0 %v6687_v7 }
 0x7eb   : > { %5401 = vmatprep.subr.bf16.mxu0 %v6763_v52 }
 0x7ee   : > { %5403 = vmatpush3.bf16.msra.mxu0 %v6763_v52 }
 0x8a0   : > { %v4666_v16 = vpop.f32.mrb[12].mxu0 }
 0x8a1   : > { %v2156_v22 = vpop.f32.mrb[13].mxu0 }
 0x8a4   : > { %v4673_v46 = vpop.f32.mrb[14].mxu0 }
 0x8a5   : > { %v2231_v53 = vpop.f32.mrb[15].mxu0 }
 0x8a6   : > { %4706 = vmatprep.mubr.f32.mxu1 %v2231_v53 }
 0x8a7   : > { %4707 = vmatmul.mubr.f32.vlgmr.msra.gmra.mrb[10].mxu1 %v4673_v46 }
 0x8a8   : > { %5343 = vmatpush3.bf16.msra.mxu1 %v6661_v50  ;;  %4741 = vmatprep.mubr.f32.mxu1 %v2156_v22 }
 0x8a9   : > { %5345 = vmatprep.subr.bf16.mxu1 %v6698_v19 }
 0x8ac   : > { %5347 = vmatpush3.bf16.msra.mxu1 %v6698_v19 }
 0x8ad   : > { %5349 = vmatprep.subr.bf16.mxu1 %v6708_v24 }
 0x8b0   : > { %5351 = vmatpush3.bf16.msra.mxu1 %v6708_v24 }
 0x8b1   : > { %5353 = vmatprep.subr.bf16.mxu1 %v6718_v30 }
 0x8b4   : > { %5355 = vmatpush3.bf16.msra.mxu1 %v6718_v30 }
 0x8b5   : > { %5357 = vmatprep.subr.bf16.mxu1 %v6728_v34 }
 0x8b8   : > { %5359 = vmatpush3.bf16.msra.mxu1 %v6728_v34 }
 0x8b9   : > { %5361 = vmatprep.subr.bf16.mxu1 %v6738_v39 }
 0x8bc   : > { %5363 = vmatpush3.bf16.msra.mxu1 %v6738_v39 }
 0x8bd   : > { %5365 = vmatprep.subr.bf16.mxu1 %v6748_v43 }
 0x8c0   : > { %5367 = vmatpush3.bf16.msra.mxu1 %v6748_v43 }
 0x8c1   : > { %5369 = vmatprep.subr.bf16.mxu1 %v6758_v48 }
 0x8c4   : > { %5371 = vmatpush3.bf16.msra.mxu1 %v6758_v48 }
 0x8c5   : > { %5461 = vmatprep.subr.bf16.mxu1 %v6878_v0 }
 0x8c7   : > { %4742 = vmatmul.mubr.f32.vlgmr.msra.gmra.mrb[10].mxu1 %v4666_v16 }
 0x8c8   : > { %5463 = vmatpush3.bf16.msra.mxu1 %v6878_v0 }
 0x8c9   : > { %5465 = vmatprep.subr.bf16.mxu1 %v6881_v17 }
 0x8cc   : > { %5467 = vmatpush3.bf16.msra.mxu1 %v6881_v17 }
 0x8cd   : > { %5469 = vmatprep.subr.bf16.mxu1 %v6887_v27 }
 0x8d0   : > { %5471 = vmatpush3.bf16.msra.mxu1 %v6887_v27 }
 0x8d1   : > { %5473 = vmatprep.subr.bf16.mxu1 %v6891_v45 }
 0x8d4   : > { %5475 = vmatpush3.bf16.msra.mxu1 %v6891_v45 }
 0x8d5   : > { %5477 = vmatprep.subr.bf16.mxu1 %v6895_v63 }
 0x8d8   : > { %5479 = vmatpush3.bf16.msra.mxu1 %v6895_v63 }
 0x8d9   : > { %5481 = vmatprep.subr.bf16.mxu1 %v6899_v13 }
 0x8dc   : > { %5483 = vmatpush3.bf16.msra.mxu1 %v6899_v13 }
 0x8dd   : > { %5485 = vmatprep.subr.bf16.mxu1 %v6904_v40 }
 0x8e0   : > { %5487 = vmatpush3.bf16.msra.mxu1 %v6904_v40 }
 0x8e1   : > { %5489 = vmatprep.subr.bf16.mxu1 %v6908_v6 }
 0x8e4   : > { %5491 = vmatpush3.bf16.msra.mxu1 %v6908_v6 }
 0x8e5   : > { %5501 = vmatprep.subr.bf16.mxu1 %v6614_v25 }
 0x99a   : > { %v4743_v23 = vpop.f32.mrb[10].mxu1 }
 0x99b   : > { %v2391_v31 = vadd.f32 %v4743_v23, %v6770_v55  ;;  %v2381_v37 = vpop.f32.mrb[11].mxu1 }
 0x99c   : > { %v2390_v14 = vadd.f32 %v2381_v37, %v6772_v57 }
 0x99d   : > { %v2393_v16 = vmax.f32 %v2391_v31, 0.0 }
 0x99e   : > { %v2392_v36 = vmax.f32 %v2390_v14, 0.0 }
 0x9a0   : > { %4776 = vmatprep.mubr.f32.mxu0 %v2392_v36  ;;  %v7336_v36 = vld [vmem:[#allocation31_spill] sm:$0xff] }
 0x9a1   : > { %4777 = vmatmul.mubr.f32.vlgmr.msra.gmra.mrb[16].mxu0 %v2393_v16 }
 0x9a2   : > { %4783 = vmatprep.mubr.msk.f32.mxu0 %vm1032_vm3, %v6826_v49 }
 0xa74   : > { %v4778_v22 = vpop.f32.mrb[16].mxu0 }
 0xa75   : > { %v2466_v46 = vadd.f32 %v4778_v22, %v6779_v3  ;;  %v2460_v53 = vpop.f32.mrb[17].mxu0 }
 0xa76   : > { %v2461_v6 = vadd.f32 %v6779_v3, %v2460_v53 }
 0xa78   : > { %v5866_v40 = vpack.i.bf16 %v2466_v46, %v2461_v6  ;;  %v5408_v13 = vpack.c.bf16 %v2466_v46, %v2461_v6 }
 0xa7a   : > { %5867 = vrot.lane.b32.xlu1 %v5866_v40, %s6204_s4  ;;  %v7335_v40 = vld [vmem:[#allocation35_spill] sm:$0xff] }
 0xaec   : > { %v5868_v23 = vpop.permute.xlu1 %5867 }
 0xaed   : > { %v5870_v55 = vunpack.i.h.bf16 %v5868_v23  ;;  %v5869_v37 = vunpack.i.l.bf16 %v5868_v23 }
 0xaef   : > { %v5404_v14 = vpack.c.bf16 %v5870_v55, %v5869_v37  ;;  %v7333_v55 = vld [vmem:[#allocation33_spill] sm:$0xff] }
 0xaf1   : > { %5405 = vmatprep.subr.bf16.mxu0 %v5404_v14 }
 0xaf2   : > { %5407 = vmatpush3.bf16.msra.mxu0 %v5404_v14  ;;  %v3648_v14 = vld [vmem:[#allocation14 + $0x50] sm:$0xff] }
 0xaf3   : > { %5409 = vmatprep.subr.bf16.mxu0 %v5408_v13 }
 0xaf5   : > { %4784 = vmatmul.mubr.msk.f32.vlgmr.msra.gmra.mrb[18].mxu0 %vm1032_vm3, %v6834_v61 }
 0xaf6   : > { %5411 = vmatpush3.bf16.msra.mxu0 %v5408_v13  ;;  %4790 = vmatprep.mubr.msk.f32.mxu0 %vm1032_vm3, %v6830_v58  ;;  %v7334_v13 = vld [vmem:[#allocation34_spill] sm:$0xff] }
 0xaf7   : > { %5413 = vmatprep.subr.bf16.mxu0 %v6832_v60 }
 0xafd   : > { %4791 = vmatmul.mubr.msk.f32.vlgmr.msra.gmra.mrb[18].mxu0 %vm1032_vm3, %v6841_v2 }
 0xafe   : > { %5415 = vmatpush3.bf16.msra.mxu0 %v6832_v60  ;;  %4825 = vmatprep.mubr.f32.mxu0 %v6947_v8 }
 0xaff   : > { %5417 = vmatprep.subr.bf16.mxu0 %v6843_v5 }
 0xb02   : > { %5419 = vmatpush3.bf16.msra.mxu0 %v6843_v5 }
 0xb03   : > { %5421 = vmatprep.subr.bf16.mxu0 %v6850_v12 }
 0xb06   : > { %5423 = vmatpush3.bf16.msra.mxu0 %v6850_v12 }
 0xb07   : > { %5425 = vmatprep.subr.bf16.mxu0 %v6854_v15 }
 0xb0a   : > { %5427 = vmatpush3.bf16.msra.mxu0 %v6854_v15 }
 0xb0b   : > { %5429 = vmatprep.subr.bf16.mxu0 %v6858_v21 }
 0xb0e   : > { %5431 = vmatpush3.bf16.msra.mxu0 %v6858_v21 }
 0xb0f   : > { %5433 = vmatprep.subr.bf16.mxu0 %v6862_v33 }
 0xb12   : > { %5435 = vmatpush3.bf16.msra.mxu0 %v6862_v33 }
 0xb13   : > { %5437 = vmatprep.subr.bf16.mxu0 %v6866_v42 }
 0xb16   : > { %5439 = vmatpush3.bf16.msra.mxu0 %v6866_v42 }
 0xb17   : > { %5441 = vmatprep.subr.bf16.mxu0 %v6870_v51 }
 0xb1a   : > { %5443 = vmatpush3.bf16.msra.mxu0 %v6870_v51 }
 0xb1b   : > { %5445 = vmatprep.subr.bf16.mxu0 %v6795_v20 }
 0xb1d   : > { %4826 = vmatmul.mubr.f32.vlgmr.msra.gmra.mrb[20].mxu0 %v6944_v18 }
 0xb1e   : > { %5447 = vmatpush3.bf16.msra.mxu0 %v6795_v20 }
 0xb1f   : > { %5449 = vmatprep.subr.bf16.mxu0 %v7333_v55 }
 0xb22   : > { %5451 = vmatpush3.bf16.msra.mxu0 %v7333_v55 }
 0xb23   : > { %5453 = vmatprep.subr.bf16.mxu0 %v7334_v13 }
 0xb26   : > { %5455 = vmatpush3.bf16.msra.mxu0 %v7334_v13 }
 0xb27   : > { %5457 = vmatprep.subr.bf16.mxu0 %v7335_v40 }
 0xb2a   : > { %5459 = vmatpush3.bf16.msra.mxu0 %v7335_v40 }
 0xbd0   : > { %v4792_v6 = vpop.f32.mrb[18].mxu0 }
 0xbd1   : > { %v2618_v31 = vpop.f32.mrb[19].mxu0 }
 0xbd2   : > { %4844 = vmatprep.mubr.msk.f32.mxu0 %vm1897_vm4, %v2618_v31  ;;  %v3650_v31 = vld [vmem:[#allocation14 + $0x60] sm:$0xff] }
 0xbd3   : > { %4845 = vmatmul.mubr.msk.f32.vlgmr.msra.gmra.mrb[20].mxu0 %vm1897_vm4, %v4792_v6 }
 0xbd4   : > { %4886 = vmatprep.mubr.msk.f32.mxu0 %vm1032_vm3, %v7336_v36  ;;  %v3652_v36 = vld [vmem:[#allocation14 + $0x70] sm:$0xff] }
 0xca6   : > { %v4846_v16 = vpop.f32.mrb[20].mxu0 }
 0xca7   : > { %v2784_v22 = vadd.f32 %v4846_v16, %v6916_v26  ;;  %v2774_v46 = vpop.f32.mrb[21].mxu0  ;;  %v3655_v16 = vld [vmem:[#allocation14 + $0x88] sm:$0xff] }
 0xca8   : > { %v2783_v53 = vadd.f32 %v6916_v26, %v2774_v46  ;;  %v5698_v46 = vpack.c.bf16 %v3652_v36, %v3650_v31 }
 0xca9   : > { %v2786_v37 = vmax.f32 %v2784_v22, 0.0  ;;  %v3657_v22 = vld [vmem:[#allocation14 + $0x98] sm:$0xff] }
 0xcaa   : > { %v2785_v23 = vmax.f32 %v2783_v53, 0.0  ;;  %v5700_v53 = vpack.c.bf16 %v3657_v22, %v3655_v16 }
 0xcac   : > { %4879 = vmatprep.mubr.f32.mxu1 %v2785_v23  ;;  %v3654_v23 = vld [vmem:[#allocation14 + $0x80] sm:$0xff] }
 0xcad   : > { %4880 = vmatmul.mubr.f32.vlgmr.msra.gmra.mrb[12].mxu1 %v2786_v37  ;;  %v3656_v37 = vld [vmem:[#allocation14 + $0x90] sm:$0xff] }
 0xcae   : > { %5503 = vmatpush3.bf16.msra.mxu1 %v6614_v25 }
 0xcaf   : > { %5505 = vmatprep.subr.bf16.mxu1 %v6622_v29 }
 0xcb2   : > { %5507 = vmatpush3.bf16.msra.mxu1 %v6622_v29 }
 0xcb3   : > { %5509 = vmatprep.subr.bf16.mxu1 %v6630_v32 }
 0xcb6   : > { %5511 = vmatpush3.bf16.msra.mxu1 %v6630_v32 }
 0xcb7   : > { %5513 = vmatprep.subr.bf16.mxu1 %v6634_v35 }
 0xcba   : > { %5515 = vmatpush3.bf16.msra.mxu1 %v6634_v35 }
 0xcbb   : > { %5517 = vmatprep.subr.bf16.mxu1 %v6638_v38 }
 0xcbe   : > { %5519 = vmatpush3.bf16.msra.mxu1 %v6638_v38 }
 0xcbf   : > { %5521 = vmatprep.subr.bf16.mxu1 %v6642_v41 }
 0xcc2   : > { %5523 = vmatpush3.bf16.msra.mxu1 %v6642_v41 }
 0xcc3   : > { %5525 = vmatprep.subr.bf16.mxu1 %v6646_v44 }
 0xcc6   : > { %5527 = vmatpush3.bf16.msra.mxu1 %v6646_v44 }
 0xcc7   : > { %5529 = vmatprep.subr.bf16.mxu1 %v6651_v47 }
 0xcca   : > { %5531 = vmatpush3.bf16.msra.mxu1 %v6651_v47 }
 0xccb   : > { %5533 = vmatprep.subr.bf16.mxu1 %v6661_v50 }
 0xd80   : > { %v4881_v25 = vpop.f32.mrb[12].mxu1 }
 0xd81   : > { %v2859_v29 = vadd.f32 %v4881_v25, %v6939_v10  ;;  %v2853_v32 = vpop.f32.mrb[13].mxu1  ;;  %v3659_v25 = vld [vmem:[#allocation14 + $0xa8] sm:$0xff] }
 0xd82   : > { %v2854_v35 = vadd.f32 %v6939_v10, %v2853_v32  ;;  %v5702_v32 = vpack.c.bf16 %v3656_v37, %v3654_v23 }
 0xd83   : > { %v7069_v38 = vadd.f32 %v2859_v29, %v6944_v18  ;;  %v3661_v29 = vld [vmem:[#allocation14 + $0xb8] sm:$0xff] }
 0xd84   : > { %v7072_v41 = vadd.f32 %v2854_v35, %v6947_v8  ;;  %v3646_v8 = vld [vmem:[#allocation14 + $0x40] sm:$0xff]  ;;  %v5704_v35 = vpack.c.bf16 %v3661_v29, %v3659_v25 }
 0xd86   : > { %v5492_v44 = vpack.c.bf16 %v7069_v38, %v7072_v41 }
 0xd88   : > { %5493 = vmatprep.subr.bf16.mxu0 %v5492_v44 }
 0xd89   : > { %5495 = vmatpush3.bf16.msra.mxu0 %v5492_v44 }
 0xd8a   : > { %5497 = vmatprep.subr.bf16.mxu0 %v5492_v44 }
 0xd8c   : > { %4887 = vmatmul.mubr.msk.f32.vlgmr.msra.gmra.mrb[22].mxu0 %vm1032_vm3, %v6617_v28 }
 0xd8d   : > { %5499 = vmatpush3.bf16.msra.mxu0 %v5492_v44  ;;  %4893 = vmatprep.mubr.msk.f32.mxu0 %vm1032_vm3, %v6591_v9  ;;  %v3658_v44 = vld [vmem:[#allocation14 + $0xa0] sm:$0xff] }
 0xd8e   : > { %5565 = vmatprep.subr.bf16.mxu0 %v6664_v54 }
 0xd90   : > { %4894 = vmatmul.mubr.msk.f32.vlgmr.msra.gmra.mrb[24].mxu0 %vm1032_vm3, %v6599_v11 }
 0xd91   : > { %5567 = vmatpush3.bf16.msra.mxu0 %v6664_v54  ;;  %v7338_v54 = vld [vmem:[#allocation37_spill] sm:$0xff] }
 0xd92   : > { %5569 = vmatprep.subr.bf16.mxu0 %v6666_v56 }
 0xd95   : > { %5571 = vmatpush3.bf16.msra.mxu0 %v6666_v56  ;;  %v7339_v56 = vld [vmem:[#allocation38_spill] sm:$0xff] }
 0xd96   : > { %5573 = vmatprep.subr.bf16.mxu0 %v6671_v59 }
 0xd99   : > { %5575 = vmatpush3.bf16.msra.mxu0 %v6671_v59 }
 0xd9a   : > { %5577 = vmatprep.subr.bf16.mxu0 %v6675_v62 }
 0xd9d   : > { %5579 = vmatpush3.bf16.msra.mxu0 %v6675_v62  ;;  %v7340_v62 = vld [vmem:[#allocation32_spill] sm:$0xff] }
 0xd9e   : > { %5581 = vmatprep.subr.bf16.mxu0 %v6679_v1 }
 0xda1   : > { %5583 = vmatpush3.bf16.msra.mxu0 %v6679_v1 }
 0xda2   : > { %5585 = vmatprep.subr.bf16.mxu0 %v6683_v4 }
 0xda5   : > { %5587 = vmatpush3.bf16.msra.mxu0 %v6683_v4 }
 0xda6   : > { %5589 = vmatprep.subr.bf16.mxu0 %v6687_v7 }
 0xda9   : > { %5591 = vmatpush3.bf16.msra.mxu0 %v6687_v7 }
 0xdaa   : > { %5593 = vmatprep.subr.bf16.mxu0 %v6763_v52 }
 0xdad   : > { %5595 = vmatpush3.bf16.msra.mxu0 %v6763_v52 }
 0xe5f   : > { %v4888_v9 = vpop.f32.mrb[22].mxu0 }
 0xe60   : > { %v2930_v11 = vpop.f32.mrb[23].mxu0 }
 0xe63   : > { %v4895_v28 = vpop.f32.mrb[24].mxu0 }
 0xe64   : > { %v3005_v47 = vpop.f32.mrb[25].mxu0 }
 0xe65   : > { %4928 = vmatprep.mubr.f32.mxu1 %v3005_v47 }
 0xe66   : > { %4929 = vmatmul.mubr.f32.vlgmr.msra.gmra.mrb[14].mxu1 %v4895_v28  ;;  %v3665_v28 = vld [vmem:[#allocation14 + $0xd8] sm:$0xff] }
 0xe67   : > { %5535 = vmatpush3.bf16.msra.mxu1 %v6661_v50  ;;  %4963 = vmatprep.mubr.f32.mxu1 %v2930_v11  ;;  %v7337_v50 = vld [vmem:[#allocation36_spill] sm:$0xff]  ;;  %v3663_v11 = vld [vmem:[#allocation14 + $0xc8] sm:$0xff] }
 0xe68   : > { %5537 = vmatprep.subr.bf16.mxu1 %v6698_v19 }
 0xe6b   : > { %5539 = vmatpush3.bf16.msra.mxu1 %v6698_v19 }
 0xe6c   : > { %5541 = vmatprep.subr.bf16.mxu1 %v6708_v24 }
 0xe6f   : > { %5543 = vmatpush3.bf16.msra.mxu1 %v6708_v24 }
 0xe70   : > { %5545 = vmatprep.subr.bf16.mxu1 %v6718_v30 }
 0xe73   : > { %5547 = vmatpush3.bf16.msra.mxu1 %v6718_v30 }
 0xe74   : > { %5549 = vmatprep.subr.bf16.mxu1 %v6728_v34 }
 0xe77   : > { %5551 = vmatpush3.bf16.msra.mxu1 %v6728_v34 }
 0xe78   : > { %5553 = vmatprep.subr.bf16.mxu1 %v6738_v39 }
 0xe7b   : > { %5555 = vmatpush3.bf16.msra.mxu1 %v6738_v39 }
 0xe7c   : > { %5557 = vmatprep.subr.bf16.mxu1 %v6748_v43 }
 0xe7f   : > { %5559 = vmatpush3.bf16.msra.mxu1 %v6748_v43 }
 0xe80   : > { %5561 = vmatprep.subr.bf16.mxu1 %v6758_v48 }
 0xe83   : > { %5563 = vmatpush3.bf16.msra.mxu1 %v6758_v48 }
 0xe84   : > { %5653 = vmatprep.subr.bf16.mxu1 %v6878_v0 }
 0xe86   : > { %4964 = vmatmul.mubr.f32.vlgmr.msra.gmra.mrb[14].mxu1 %v4888_v9  ;;  %v3660_v9 = vld [vmem:[#allocation14 + $0xb0] sm:$0xff] }
 0xe87   : > { %5655 = vmatpush3.bf16.msra.mxu1 %v6878_v0  ;;  %v5706_v47 = vpack.c.bf16 %v3660_v9, %v3658_v44 }
 0xe88   : > { %5657 = vmatprep.subr.bf16.mxu1 %v6881_v17 }
 0xe8b   : > { %5659 = vmatpush3.bf16.msra.mxu1 %v6881_v17 }
 0xe8c   : > { %5661 = vmatprep.subr.bf16.mxu1 %v6887_v27 }
 0xe8f   : > { %5663 = vmatpush3.bf16.msra.mxu1 %v6887_v27 }
 0xe90   : > { %5665 = vmatprep.subr.bf16.mxu1 %v6891_v45 }
 0xe93   : > { %5667 = vmatpush3.bf16.msra.mxu1 %v6891_v45  ;;  %v3649_v45 = vld [vmem:[#allocation14 + $0x58] sm:$0xff] }
 0xe94   : > { %5669 = vmatprep.subr.bf16.mxu1 %v6895_v63 }
 0xe97   : > { %5671 = vmatpush3.bf16.msra.mxu1 %v6895_v63 }
 0xe98   : > { %5673 = vmatprep.subr.bf16.mxu1 %v7337_v50 }
 0xe9b   : > { %5675 = vmatpush3.bf16.msra.mxu1 %v7337_v50  ;;  %v5708_v50 = vpack.c.bf16 %v3665_v28, %v3663_v11 }
 0xe9c   : > { %5677 = vmatprep.subr.bf16.mxu1 %v7338_v54 }
 0xe9f   : > { %5679 = vmatpush3.bf16.msra.mxu1 %v7338_v54  ;;  %v3662_v54 = vld [vmem:[#allocation14 + $0xc0] sm:$0xff] }
 0xea0   : > { %5681 = vmatprep.subr.bf16.mxu1 %v7339_v56 }
 0xea3   : > { %5683 = vmatpush3.bf16.msra.mxu1 %v7339_v56  ;;  %v3664_v56 = vld [vmem:[#allocation14 + $0xd0] sm:$0xff] }
 0xf59   : > { %v4965_v59 = vpop.f32.mrb[14].mxu1 }
 0xf5a   : > { %v3165_v1 = vadd.f32 %v4965_v59, %v7340_v62  ;;  %v3155_v4 = vpop.f32.mrb[15].mxu1  ;;  %v5710_v59 = vpack.c.bf16 %v3664_v56, %v3662_v54 }
 0xf5b   : > { %v3164_v7 = vadd.f32 %v3155_v4, %v6772_v57 }
 0xf5c   : > { %v3167_v24 = vmax.f32 %v3165_v1, 0.0 }
 0xf5d   : > { %v3166_v19 = vmax.f32 %v3164_v7, 0.0 }
 0xf5f   : > { %4998 = vmatprep.mubr.f32.mxu0 %v3166_v19 }
 0xf60   : > { %4999 = vmatmul.mubr.f32.vlgmr.msra.gmra.mrb[26].mxu0 %v3167_v24 }
 0xf61   : > { %5005 = vmatprep.mubr.msk.f32.mxu0 %vm1032_vm3, %v6826_v49 }
0x1033   : > { %v5000_v30 = vpop.f32.mrb[26].mxu0 }
0x1034   : > { %v3240_v34 = vadd.f32 %v5000_v30, %v6779_v3  ;;  %v3234_v39 = vpop.f32.mrb[27].mxu0  ;;  %v3667_v30 = vld [vmem:[#allocation14 + $0xe8] sm:$0xff] }
0x1035   : > { %v3235_v43 = vadd.f32 %v6779_v3, %v3234_v39 }
0x1037   : > { %v5871_v48 = vpack.i.bf16 %v3240_v34, %v3235_v43  ;;  %v5600_v52 = vpack.c.bf16 %v3240_v34, %v3235_v43  ;;  %v3669_v34 = vld [vmem:[#allocation14 + $0xf8] sm:$0xff]  ;;  %v3666_v43 = vld [vmem:[#allocation14 + $0xe0] sm:$0xff] }
0x1038   : > { %v5712_v39 = vpack.c.bf16 %v3669_v34, %v3667_v30 }
0x1039   : > { %5872 = vrot.lane.b32.xlu0 %v5871_v48, %s6204_s4  ;;  %v3668_v48 = vld [vmem:[#allocation14 + $0xf0] sm:$0xff] }
0x10ab   : > { %v5873_v0 = vpop.permute.xlu0 %5872 }
0x10ac   : > { %v5875_v17 = vunpack.i.h.bf16 %v5873_v0  ;;  %v5874_v57 = vunpack.i.l.bf16 %v5873_v0  ;;  %v6205_v0 = vmov 0.0  }
0x10ae   : > { %v5596_v27 = vpack.c.bf16 %v5875_v17, %v5874_v57 }
0x10b0   : > { %5597 = vmatprep.subr.bf16.mxu0 %v5596_v27 }
0x10b1   : > { %5599 = vmatpush3.bf16.msra.mxu0 %v5596_v27 }
0x10b2   : > { %5601 = vmatprep.subr.bf16.mxu0 %v5600_v52 }
0x10b4   : > { %5006 = vmatmul.mubr.msk.f32.vlgmr.msra.gmra.mrb[28].mxu0 %vm1032_vm3, %v6834_v61 }
0x10b5   : > { %5603 = vmatpush3.bf16.msra.mxu0 %v5600_v52  ;;  %5012 = vmatprep.mubr.msk.f32.mxu0 %vm1032_vm3, %v6830_v58  ;;  %v3639_v58 = vld [vmem:[#allocation14 + $0x8] sm:$0xff]  ;;  %v5714_v52 = vpack.c.bf16 %v3668_v48, %v3666_v43 }
0x10b6   : > { %5605 = vmatprep.subr.bf16.mxu0 %v6832_v60 }
0x10bc   : > { %5013 = vmatmul.mubr.msk.f32.vlgmr.msra.gmra.mrb[28].mxu0 %vm1032_vm3, %v6841_v2  ;;  %v3640_v2 = vld [vmem:[#allocation14 + $0x10] sm:$0xff] }
0x10bd   : > { %5607 = vmatpush3.bf16.msra.mxu0 %v6832_v60  ;;  %5047 = vmatprep.mubr.f32.mxu0 %v7072_v41  ;;  %v3638_v60 = vld [vmem:[#allocation14] sm:$0xff] }
0x10be   : > { %5609 = vmatprep.subr.bf16.mxu0 %v6843_v5 }
0x10c1   : > { %5611 = vmatpush3.bf16.msra.mxu0 %v6843_v5  ;;  %v3643_v5 = vld [vmem:[#allocation14 + $0x28] sm:$0xff] }
0x10c2   : > { %5613 = vmatprep.subr.bf16.mxu0 %v6850_v12 }
0x10c5   : > { %5615 = vmatpush3.bf16.msra.mxu0 %v6850_v12  ;;  %v3645_v12 = vld [vmem:[#allocation14 + $0x38] sm:$0xff] }
0x10c6   : > { %5617 = vmatprep.subr.bf16.mxu0 %v6854_v15 }
0x10c9   : > { %5619 = vmatpush3.bf16.msra.mxu0 %v6854_v15  ;;  %v5686_v15 = vpack.c.bf16 %v3640_v2, %v3638_v60 }
0x10ca   : > { %5621 = vmatprep.subr.bf16.mxu0 %v6858_v21 }
0x10cd   : > { %5623 = vmatpush3.bf16.msra.mxu0 %v6858_v21  ;;  %v5688_v21 = vpack.c.bf16 %v3645_v12, %v3643_v5 }
0x10ce   : > { %5625 = vmatprep.subr.bf16.mxu0 %v6862_v33 }
0x10d1   : > { %5627 = vmatpush3.bf16.msra.mxu0 %v6862_v33  ;;  %v3642_v33 = vld [vmem:[#allocation14 + $0x20] sm:$0xff] }
0x10d2   : > { %5629 = vmatprep.subr.bf16.mxu0 %v6866_v42 }
0x10d5   : > { %5631 = vmatpush3.bf16.msra.mxu0 %v6866_v42  ;;  %v3644_v42 = vld [vmem:[#allocation14 + $0x30] sm:$0xff] }
0x10d6   : > { %5633 = vmatprep.subr.bf16.mxu0 %v6870_v51  ;;  %v5690_v63 = vpack.c.bf16 %v3644_v42, %v3642_v33 }
0x10d9   : > { %5635 = vmatpush3.bf16.msra.mxu0 %v6870_v51  ;;  %v3647_v51 = vld [vmem:[#allocation14 + $0x48] sm:$0xff] }
0x10da   : > { %5637 = vmatprep.subr.bf16.mxu0 %v6795_v20  ;;  %v5692_v18 = vpack.c.bf16 %v3649_v45, %v3647_v51 }
0x10dc   : > { %5048 = vmatmul.mubr.f32.vlgmr.msra.gmra.mrb[30].mxu0 %v7069_v38 }
0x10dd   : > { %5639 = vmatpush3.bf16.msra.mxu0 %v6795_v20  ;;  %v3641_v20 = vld [vmem:[#allocation14 + $0x18] sm:$0xff] }
0x10de   : > { %5641 = vmatprep.subr.bf16.mxu0 %v7333_v55  ;;  %v5684_v61 = vpack.c.bf16 %v3641_v20, %v3639_v58  ;;  %v3672_v58 = vlaneseq }
0x10e0   : > { %v3673_v20 = vshrl.u32 %v3672_v58, 7 }
0x10e1   : > { %5643 = vmatpush3.bf16.msra.mxu0 %v7333_v55  ;;  %v3651_v55 = vld [vmem:[#allocation14 + $0x68] sm:$0xff] }
0x10e2   : > { %5645 = vmatprep.subr.bf16.mxu0 %v7334_v13  ;;  %v3674_v60 = vsub.s32 0, %v3673_v20 }
0x10e5   : > { %5647 = vmatpush3.bf16.msra.mxu0 %v7334_v13  ;;  %v3653_v13 = vld [vmem:[#allocation14 + $0x78] sm:$0xff] }
0x10e6   : > { %5649 = vmatprep.subr.bf16.mxu0 %v7335_v40  ;;  %v5696_v6 = vpack.c.bf16 %v3653_v13, %v3651_v55 }
0x10e9   : > { %5651 = vmatpush3.bf16.msra.mxu0 %v7335_v40  ;;  %v5694_v40 = vpack.c.bf16 %v3648_v14, %v3646_v8 }
0x10ea   : > { %5685 = vmatprep.subr.bf16.mxu0 %v5684_v61  ;;  %v3670_v61 = vld [vmem:[%s7341_s25] sm:$0x3] }
0x10eb   : > { %v3675_v2 = vrot.slane %v3670_v61, %v3674_v60 }
0x118f   : > { %v5014_v3 = vpop.f32.mrb[28].mxu0 }
0x1190   : > { %v3392_v49 = vpop.f32.mrb[29].mxu0 }
0x1191   : > { %5066 = vmatprep.mubr.msk.f32.mxu0 %vm1897_vm4, %v3392_v49 }
0x1192   : > { %5067 = vmatmul.mubr.msk.f32.vlgmr.msra.gmra.mrb[30].mxu0 %vm1897_vm4, %v5014_v3 }
0x1193   : > { %5687 = vmatpush1.bf16.msra.mxu0 %v5686_v15  ;;  %3746 = vmatprep.mubr.f32.mxu0 %v6205_v0 }
0x1194   : > { %5689 = vmatprep.subr.bf16.mxu0 %v5688_v21 }
0x1197   : > { %5691 = vmatpush1.bf16.msra.mxu0 %v5690_v63  ;;  %v3678_v63 = vsub.s32 1, %v3673_v20 }
0x1198   : > { %5693 = vmatprep.subr.bf16.mxu0 %v5692_v18 }
0x1199   : > { %v3679_v8 = vrot.slane %v3670_v61, %v3678_v63 }
0x119b   : > { %5695 = vmatpush1.bf16.msra.mxu0 %v5694_v40 }
0x119c   : > { %5697 = vmatprep.subr.bf16.mxu0 %v5696_v6 }
0x119f   : > { %5699 = vmatpush1.bf16.msra.mxu0 %v5698_v46 }
0x11a0   : > { %5701 = vmatprep.subr.bf16.mxu0 %v5700_v53 }
0x11a3   : > { %5703 = vmatpush1.bf16.msra.mxu0 %v5702_v32 }
0x11a4   : > { %5705 = vmatprep.subr.bf16.mxu0 %v5704_v35 }
0x11a7   : > { %5707 = vmatpush1.bf16.msra.mxu0 %v5706_v47 }
0x11a8   : > { %5709 = vmatprep.subr.bf16.mxu0 %v5708_v50 }
0x11ab   : > { %5711 = vmatpush1.bf16.msra.mxu0 %v5710_v59 }
0x11ac   : > { %5713 = vmatprep.subr.bf16.mxu0 %v5712_v39 }
0x11af   : > { %5715 = vmatpush1.bf16.msra.mxu0 %v5714_v52 }
0x1265   : > { %v5068_v62 = vpop.f32.mrb[30].mxu0 }
0x1266   : > { %v3558_v1 = vadd.f32 %v5068_v62, %v6916_v26  ;;  %v3548_v4 = vpop.f32.mrb[31].mxu0 }
0x1267   : > { %v3557_v7 = vadd.f32 %v6916_v26, %v3548_v4 }
0x1268   : > { %v3560_v24 = vmax.f32 %v3558_v1, 0.0 }
0x1269   : > { %v3559_v19 = vmax.f32 %v3557_v7, 0.0 }
0x126b   : > { %5101 = vmatprep.mubr.f32.mxu1 %v3559_v19 }
0x126c   : > { %5102 = vmatmul.mubr.f32.vlgmr.msra.gmra.mrb[16].mxu1 %v3560_v24 }
0x133f   : > { %v5103_v17 = vpop.f32.mrb[16].mxu1 }
0x1340   : > { %v3627_v57 = vpop.f32.mrb[17].mxu1  ;;  %v3633_v26 = vadd.f32 %v5103_v17, %v6939_v10 }
0x1341   : > { %v3628_v27 = vadd.f32 %v6939_v10, %v3627_v57 }
0x1342   : > { %v3637_v49 = vadd.f32 %v3633_v26, %v7069_v38 }
0x1343   : > { %v3636_v3 = vadd.f32 %v3628_v27, %v7072_v41 }
0x1345   : > { %3747 = vmatmul.mubr.f32.vlgmr.msra.gmra.mrb[32].mxu0 %v3636_v3 }
0x1346   : > { %3752 = vmatprep.mubr.f32.mxu0 %v6205_v0 }
0x1349   : > { %3753 = vmatmul.mubr.f32.gmra.mrb[34].mxu0 %v3637_v49 }
0x1418   : > { %v3748_v5 = vpop.f32.mrb[32].mxu0 }
0x1419   : > { %v3749_v12 = vadd.f32 %v3748_v5, %v3675_v2  ;;  %v3750_v15 = vpop.f32.mrb[33].mxu0 }
0x141a   : > { %v3751_v14 = vadd.f32 %v3750_v15, %v3679_v8 }
0x141b   : > { %v4046_v10 = vmul.f32 -1.442695, %v3749_v12 }
0x141c   : > { %v3754_v21 = vpop.f32.mrb[34].mxu0 }
0x141d   : > { %5876 = vpow2.f32 %v4046_v10  ;;  %v3755_v41 = vadd.f32 %v3754_v21, %v3675_v2  ;;  %v3756_v33 = vpop.f32.mrb[35].mxu0 }
0x141e   : > { %v3757_v40 = vadd.f32 %v3756_v33, %v3679_v8 }
0x141f   : > { %v4047_v42 = vmul.f32 -1.442695, %v3755_v41 }
0x1421   : > { %5878 = vpow2.f32 %v4047_v42 }
0x1427   : > { %v5877_v38 = vpop.eup %5876 }
0x1428   : > { %v3765_v51 = vadd.f32 1.0, %v5877_v38 }
0x142a   : > { %5880 = vrcp.f32 %v3765_v51 }
0x142b   : > { %v5879_v45 = vpop.eup %5878 }
0x142c   : > { %v3766_v18 = vadd.f32 1.0, %v5879_v45 }
0x142e   : > { %5882 = vrcp.f32 %v3766_v18 }
0x1434   : > { %v5881_v55 = vpop.eup %5880 }
0x1435   : > { %v3771_v13 = vmul.f32 %v5881_v55, %v3751_v14 }
0x1438   : > { %v5883_v6 = vpop.eup %5882 }
0x1439   : > { %v3772_v31 = vmul.f32 %v5883_v6, %v3757_v40 }
0x143b   : > { %v4061_v36 = vpack.c.bf16 %v3772_v31, %v3771_v13 }
0x143d   : > { %4062 = vst [vmem:[%s809_s1] sm:$0xff] %v4061_v36  }
0x143e   : > { %6121 = shalt.err (!%p6118_p9)
}
0x143f   : > { %s6122_s5 = scalar_lea.hbm %s7184_s30, 128  ;;  %s6126_s26 = scalar_lea.hbm %s7344_s22, 256 }
0x1440   : > { %p6123_p12 = scmp.ne.s32.totalorder %s7184_s30, %s6122_s5  ;;  %p6127_p3 = scmp.lt.u32.totalorder %s7184_s30, %s7344_s22 }
0x1441   : > { %p6128_p4 = scmp.lt.u32.totalorder %s6126_s26, %s6122_s5  ;;  %p6130_p8 = scmp.lt.u32.totalorder %s6122_s5, %s7184_s30 }
0x1442   : > { %p6124_p10 = pnand %p6123_p12, %p7345_p11 }
0x1443   : > { %p6129_p7 = por %p6128_p4, %p6127_p3 }
0x1444   : > { %p6125_p2 = pneg %p6124_p10 }
0x1445   : > { %p6131_p13 = por %p6130_p8, %p6129_p7 }
0x1447   : > { %p6132_p1 = pnand %p6131_p13, %p6125_p2 }
0x1449   : > { %6135 = shalt.err (!%p6132_p1)
}
0x144a   : > { %s6207_s1 = smov 4  }
0x144b   : > { %5766 = dma.vmem_to_hbm [thread:$0]  (%p7345_p11), %s7186_s9, 128, %s7184_s30, %s7188_s29, %s6204_s4, %s6204_s4, %s6207_s1  }
0x144c PF: > { %s7346_s20 = sld [smem:[#allocation26_spill]]  ;;  %s7347_s0 = sld [smem:[#allocation23_spill]] }
0x144d   : > { %s7348_s2 = sld [smem:[#allocation30_spill]] }
0x1452   : > { %p5813_p0 = scmp.ge.s32.totalorder %s7346_s20, 2  ;;  %s3812_s3 = sand.u32 1, %s7347_s0  }
0x1453   : > { %p7349_p6 = scmp.ne.s32.totalorder %s7348_s2, 0  ;;  %s3813_s6 = scalar_lea.sflag [#allocation4], %s3812_s3 }
0x1455   : > { %p5794_p5 = pnand %p5813_p0, %p7349_p6 }
0x1457   : > { %6173 = dma.done.wait (!%p5794_p5), %s3813_s6, 128  }
0x1458   : > { %6175 = vsyncadd (!%p5794_p5), %s3813_s6, 4294967168  ;;  %s7350_s27 = sld [smem:[#allocation27_spill]]  ;;  %s7351_s2 = sld [smem:[#allocation24_spill]] }
0x1459   : > { %s7352_s25 = sld [smem:[#allocation25_spill]]  ;;  %s7353_s26 = sld [smem:[#allocation28_spill]] }
0x145e   : > { %p36_p9 = scmp.ge.s32.totalorder %s7350_s27, 4  }
0x1460   :  { %38 = sbr.rel (!%p36_p9) target bundleno = 20 (0x14), region = 181 }
0x1467   :  { %3818 = vsyncpa [#allocation3], 1 }
0x1468   :  { %3820 = vsyncpa [#allocation3 + $0x1], 1 }
0x1469   :  { %3821 = vsyncpa [#allocation6], 1 }
0x146a   :  { %3822 = vsyncpa [#allocation9], 1 }
0x146b   :  { %3823 = vsyncpa [#allocation12], 1 }
0x146c   :  { %3824 = vsyncpa [#allocation15], 1 }
0x146d   :  { %3825 = vsyncpa [#allocation4], 1 }
0x146e   :  { %3827 = vsyncpa [#allocation4 + $0x1], 1 }

</bundles_post_ra>
